<compile_context>
chip_gen: v5e
topology: v5e:2x2
jax: 0.10.0
libtpu: 0.0.40
codegen_flags: <defaults>
</compile_context>

<pallas_src>
import functools
import math

import jax
import jax.numpy as jnp
from jax import lax
from jax.experimental import pallas as pl
from jax.experimental.pallas import tpu as pltpu


def convlstm_cell_kernel(patch_ref, wt_ref, c_ref, h_out_ref, c_out_ref, *, hd):
    """One lane group (gb batch elements folded into lanes) per grid step.

    patch_ref : (Kpad, L)    f32  im2col of concat([x, h]); row K is all-ones
                                  (bias fold), remaining pad rows are zero.
    wt_ref    : (4*Hd, Kpad) f32  conv weights, tap-major then input-channel;
                                  column K holds the bias.
    c_ref     : (Hd, L)      f32  current cell state (lane = batch*spatial)
    h_out_ref, c_out_ref : (Hd, L) f32
    """
    # Single fused MXU matmul; f32 operands at HIGHEST precision (PyTorch
    # Conv2d parity), f32 accumulate.  Bias comes in via the folded K row.
    acc = jnp.dot(wt_ref[...], patch_ref[...],
                  preferred_element_type=jnp.float32,
                  precision=lax.Precision.HIGHEST)        # (4*Hd, L) f32

    # Gates: sublane (row) slices of the lane-dense accumulator.
    i = jax.nn.sigmoid(acc[0 * hd:1 * hd, :])
    f = jax.nn.sigmoid(acc[1 * hd:2 * hd, :])
    o = jax.nn.sigmoid(acc[2 * hd:3 * hd, :])
    g = jnp.tanh(acc[3 * hd:4 * hd, :])

    c_cur = c_ref[...]                                    # (Hd, L)
    c_next = f * c_cur + i * g
    h_out_ref[...] = o * jnp.tanh(c_next)
    c_out_ref[...] = c_next


def conv_lstm_cell(x, h, c, w_oihw, bias):
    """ConvLSTMCell forward, NCHW / OIHW (PyTorch convention), float32 in/out.

    x : (B, Cin, H, W)   h, c : (B, Hd, H, W)
    w_oihw : (4*Hd, Cin+Hd, KH, KW)   bias : (4*Hd,)
    Returns (h_next, c_next) as (B, Hd, H, W).
    """
    B, Cin, H, W = x.shape
    Hd = h.shape[1]
    Cout, C, KH, KW = w_oihw.shape
    assert C == Cin + Hd and Cout == 4 * Hd
    ph, pw = KH // 2, KW // 2
    HW = H * W
    K = KH * KW * C
    Kpad = ((K + 1 + 127) // 128) * 128      # +1 row for the folded bias

    # Batch-group size: fold the whole (small) batch into lanes; for large B
    # keep a "parallel" grid over batch groups of >=512 lanes so v7x's two
    # TensorCores each get a lane-dense slab per step.
    gb = math.gcd(B, max(1, pl.cdiv(512, HW)))
    if (gb * HW) % 128 != 0:
        gb = B                               # lane block must be 128-aligned or full-extent
    L = gb * HW
    num_groups = B // gb

    # --- wrapper-side im2col -> (Kpad, B*HW) patch matrix (f32, single chain).
    #     Rows: tap-major then input-channel; row K = 1.0 (bias fold).
    #     Columns: batch-major then spatial, so lane groups == batch groups. ---
    combined = jnp.concatenate([x, h], axis=1)                        # (B,C,H,W)
    xpad = jnp.pad(combined, ((0, 0), (0, 0), (ph, ph), (pw, pw)))
    taps = jnp.stack([xpad[:, :, ky:ky + H, kx:kx + W]
                      for ky in range(KH) for kx in range(KW)], axis=0)
    patches = jnp.transpose(taps, (0, 2, 1, 3, 4)).reshape(K, B * HW)
    patches = jnp.concatenate(
        [patches, jnp.ones((1, B * HW), patches.dtype)], axis=0)      # bias row
    patches = jnp.pad(patches, ((0, Kpad - K - 1), (0, 0)))           # (Kpad, B*HW)

    # weights: OIHW -> (Cout, KH, KW, C) -> (Cout, K); column K = bias (f32).
    wt = jnp.transpose(w_oihw, (0, 2, 3, 1)).reshape(Cout, K)
    wt = jnp.concatenate([wt, bias.reshape(Cout, 1).astype(wt.dtype)], axis=1)
    wt = jnp.pad(wt, ((0, 0), (0, Kpad - K - 1)))                     # (Cout, Kpad)

    # cell state, lane-dense with the same (batch, spatial) column order.
    c_lanes = jnp.transpose(c, (1, 0, 2, 3)).reshape(Hd, B * HW)

    kernel = functools.partial(convlstm_cell_kernel, hd=Hd)

    h_next, c_next = pl.pallas_call(
        kernel,
        grid=(num_groups,),
        in_specs=[
            pl.BlockSpec((Kpad, L), lambda g: (0, g)),
            pl.BlockSpec((Cout, Kpad), lambda g: (0, 0)),
            pl.BlockSpec((Hd, L), lambda g: (0, g)),
        ],
        out_specs=[
            pl.BlockSpec((Hd, L), lambda g: (0, g)),
            pl.BlockSpec((Hd, L), lambda g: (0, g)),
        ],
        out_shape=[
            jax.ShapeDtypeStruct((Hd, B * HW), jnp.float32),
            jax.ShapeDtypeStruct((Hd, B * HW), jnp.float32),
        ],
        compiler_params=pltpu.CompilerParams(
            dimension_semantics=("parallel",)),   # batch groups across TCs (v7x)
    )(patches, wt, c_lanes)

    h_next = jnp.transpose(h_next.reshape(Hd, B, H, W), (1, 0, 2, 3))
    c_next = jnp.transpose(c_next.reshape(Hd, B, H, W), (1, 0, 2, 3))
    return h_next, c_next


def ref_forward(x, h, c, w_oihw, bias):
    """Pure-JAX f32 reference (NCHW), mirrors the PyTorch module semantics."""
    Hd = h.shape[1]
    combined = jnp.concatenate([x, h], axis=1)
    conv = lax.conv_general_dilated(
        combined, w_oihw, window_strides=(1, 1), padding="SAME",
        dimension_numbers=("NCHW", "OIHW", "NCHW"),
        precision=lax.Precision.HIGHEST)
    conv = conv + bias.reshape(1, 4 * Hd, 1, 1)
    i = jax.nn.sigmoid(conv[:, 0 * Hd:1 * Hd])
    f = jax.nn.sigmoid(conv[:, 1 * Hd:2 * Hd])
    o = jax.nn.sigmoid(conv[:, 2 * Hd:3 * Hd])
    g = jnp.tanh(conv[:, 3 * Hd:4 * Hd])
    c_next = f * c + i * g
    h_next = o * jnp.tanh(c_next)
    return h_next, c_next


if __name__ == "__main__":
    # ConvLSTMCell(input_size=(16,16), input_dim=4, hidden_dim=8,
    #              kernel_size=(3,3), bias=True), batch=2, NCHW like PyTorch.
    B, Cin, H, W = 2, 4, 16, 16
    Hd, KH, KW = 8, 3, 3

    key = jax.random.PRNGKey(0)
    k1, k2, k3, k4, k5 = jax.random.split(key, 5)

    x = jax.random.normal(k1, (B, Cin, H, W), jnp.float32)
    h = jax.random.normal(k2, (B, Hd, H, W), jnp.float32)
    c = jax.random.normal(k3, (B, Hd, H, W), jnp.float32)

    # Conv parameters in PyTorch OIHW shape: (4*Hd, Cin+Hd, KH, KW).
    fan_in = (Cin + Hd) * KH * KW
    bound = 1.0 / (fan_in ** 0.5)
    w_oihw = jax.random.uniform(k4, (4 * Hd, Cin + Hd, KH, KW),
                                jnp.float32, -bound, bound)
    bias = jax.random.uniform(k5, (4 * Hd,), jnp.float32, -bound, bound)

    fwd = jax.jit(conv_lstm_cell)
    h_next, c_next = fwd(x, h, c, w_oihw, bias)
    jax.block_until_ready((h_next, c_next))

    # The kernel now runs the conv in f32 at HIGHEST precision, so it should
    # match the f32 reference to summation-order noise.
    h_ref, c_ref = ref_forward(x, h, c, w_oihw, bias)
    assert jnp.allclose(h_next, h_ref, atol=1e-4, rtol=1e-4), "h_next mismatch"
    assert jnp.allclose(c_next, c_ref, atol=1e-4, rtol=1e-4), "c_next mismatch"

    print("KERNEL_OK")
</pallas_src>

<mosaic_0001>
module attributes {stable_mosaic.version = 11 : i64} {
  func.func @convlstm_cell_kernel(%arg0: i32, %arg1: memref<128x512xf32, #tpu.memory_space<vmem>>, %arg2: memref<32x128xf32, #tpu.memory_space<vmem>>, %arg3: memref<8x512xf32, #tpu.memory_space<vmem>>, %arg4: memref<8x512xf32, #tpu.memory_space<vmem>>, %arg5: memref<8x512xf32, #tpu.memory_space<vmem>>) attributes {dimension_semantics = [#tpu.dimension_semantics<parallel>], iteration_bounds = array<i64: 1>, scalar_prefetch = 0 : i64, scratch_operands = 0 : i64, tpu.core_type = #tpu.core_type<tc>, window_params = [{transform_indices = @transform_0, window_bounds = array<i64: 128, 512>}, {pipeline_mode = #tpu.pipeline_mode<synchronous>, transform_indices = @transform_1, window_bounds = array<i64: 32, 128>}, {transform_indices = @transform_2, window_bounds = array<i64: 8, 512>}, {transform_indices = @transform_3, window_bounds = array<i64: 8, 512>}, {transform_indices = @transform_4, window_bounds = array<i64: 8, 512>}]} {
    %c0 = arith.constant 0 : index
    %c0_0 = arith.constant 0 : index
    %0 = vector.load %arg2[%c0, %c0_0] : memref<32x128xf32, #tpu.memory_space<vmem>>, vector<32x128xf32>
    %c0_1 = arith.constant 0 : index
    %c0_2 = arith.constant 0 : index
    %1 = vector.load %arg1[%c0_1, %c0_2] : memref<128x512xf32, #tpu.memory_space<vmem>>, vector<128x512xf32>
    %cst = arith.constant dense<0.000000e+00> : vector<32x512xf32>
    %2 = tpu.matmul %0, %1, %cst {dimension_numbers = #tpu.dot_dimension_numbers<[1], [0], [0], [1], [0, 0, 1, 1], [], []>, precision = #tpu.contract_precision<fp32>} : vector<32x128xf32>, vector<128x512xf32>, vector<32x512xf32> -> vector<32x512xf32>
    %3 = vector.extract_strided_slice %2 {offsets = [0, 0], sizes = [8, 512], strides = [1, 1]} : vector<32x512xf32> to vector<8x512xf32>
    %4 = arith.negf %3 : vector<8x512xf32>
    %5 = math.exp %4 : vector<8x512xf32>
    %cst_3 = arith.constant 1.000000e+00 : f32
    %6 = vector.broadcast %cst_3 : f32 to vector<8x512xf32>
    %7 = arith.addf %6, %5 : vector<8x512xf32>
    %8 = arith.divf %6, %7 : vector<8x512xf32>
    %9 = vector.extract_strided_slice %2 {offsets = [8, 0], sizes = [8, 512], strides = [1, 1]} : vector<32x512xf32> to vector<8x512xf32>
    %10 = arith.negf %9 : vector<8x512xf32>
    %11 = math.exp %10 : vector<8x512xf32>
    %cst_4 = arith.constant 1.000000e+00 : f32
    %12 = vector.broadcast %cst_4 : f32 to vector<8x512xf32>
    %13 = arith.addf %12, %11 : vector<8x512xf32>
    %14 = arith.divf %12, %13 : vector<8x512xf32>
    %15 = vector.extract_strided_slice %2 {offsets = [16, 0], sizes = [8, 512], strides = [1, 1]} : vector<32x512xf32> to vector<8x512xf32>
    %16 = arith.negf %15 : vector<8x512xf32>
    %17 = math.exp %16 : vector<8x512xf32>
    %cst_5 = arith.constant 1.000000e+00 : f32
    %18 = vector.broadcast %cst_5 : f32 to vector<8x512xf32>
    %19 = arith.addf %18, %17 : vector<8x512xf32>
    %20 = arith.divf %18, %19 : vector<8x512xf32>
    %21 = vector.extract_strided_slice %2 {offsets = [24, 0], sizes = [8, 512], strides = [1, 1]} : vector<32x512xf32> to vector<8x512xf32>
    %22 = math.tanh %21 : vector<8x512xf32>
    %c0_6 = arith.constant 0 : index
    %c0_7 = arith.constant 0 : index
    %23 = vector.load %arg3[%c0_6, %c0_7] : memref<8x512xf32, #tpu.memory_space<vmem>>, vector<8x512xf32>
    %24 = arith.mulf %14, %23 : vector<8x512xf32>
    %25 = arith.mulf %8, %22 : vector<8x512xf32>
    %26 = arith.addf %24, %25 : vector<8x512xf32>
    %27 = math.tanh %26 : vector<8x512xf32>
    %28 = arith.mulf %20, %27 : vector<8x512xf32>
    %c0_8 = arith.constant 0 : index
    %c0_9 = arith.constant 0 : index
    %29 = vector.load %arg4[%c0_8, %c0_9] : memref<8x512xf32, #tpu.memory_space<vmem>>, vector<8x512xf32>
    tpu.vector_store %arg4[%c0_8, %c0_9], %28 {strides = array<i32>} : memref<8x512xf32, #tpu.memory_space<vmem>>, vector<8x512xf32>,
    %c0_10 = arith.constant 0 : index
    %c0_11 = arith.constant 0 : index
    %30 = vector.load %arg5[%c0_10, %c0_11] : memref<8x512xf32, #tpu.memory_space<vmem>>, vector<8x512xf32>
    tpu.vector_store %arg5[%c0_10, %c0_11], %26 {strides = array<i32>} : memref<8x512xf32, #tpu.memory_space<vmem>>, vector<8x512xf32>,
    return
  }
  func.func @transform_0(%arg0: i32) -> (i32, i32) {
    %c0_i32 = arith.constant 0 : i32
    %c0_i32_0 = arith.constant 0 : i32
    return %c0_i32, %arg0 : i32, i32
  }
  func.func @transform_1(%arg0: i32) -> (i32, i32) {
    %c0_i32 = arith.constant 0 : i32
    %c0_i32_0 = arith.constant 0 : i32
    %c0_i32_1 = arith.constant 0 : i32
    return %c0_i32, %c0_i32_0 : i32, i32
  }
  func.func @transform_2(%arg0: i32) -> (i32, i32) {
    %c0_i32 = arith.constant 0 : i32
    %c0_i32_0 = arith.constant 0 : i32
    return %c0_i32, %arg0 : i32, i32
  }
  func.func @transform_3(%arg0: i32) -> (i32, i32) {
    %c0_i32 = arith.constant 0 : i32
    %c0_i32_0 = arith.constant 0 : i32
    return %c0_i32, %arg0 : i32, i32
  }
  func.func @transform_4(%arg0: i32) -> (i32, i32) {
    %c0_i32 = arith.constant 0 : i32
    %c0_i32_0 = arith.constant 0 : i32
    return %c0_i32, %arg0 : i32, i32
  }
}

</mosaic_0001>

<bundles_post_ra>
// kernel: conv_lstm_cell.1
= control target key start
LH: loop header
LB: loop body
LE: loop exit
PB: predicated region body
PF: predicated region fallthrough
CT: control target
= control target key end

     0   :  { %s3676_s0 = inlined_call_operand.vmem [shape: f32[128,512], index: 0, kind: input, shape index: {}]   ;;  %s3677_s1 = inlined_call_operand.vmem [shape: f32[32,128], index: 1, kind: input, shape index: {}]   ;;  %s3678_s2 = inlined_call_operand.vmem [shape: f32[8,512], index: 2, kind: input, shape index: {}]   ;;  %s3679_s4 = inlined_call_operand.vmem [shape: f32[8,512], index: 4, kind: output, shape index: {1}]   ;;  %s3680_s3 = inlined_call_operand.vmem [shape: f32[8,512], index: 3, kind: output, shape index: {0}]  }
   0x1   :  { %v80_v0 = vld [vmem:[%s3676_s0 + $0x1e0] sm:$0xff] }
   0x2   :  { %v76_v1 = vld [vmem:[%s3676_s0 + $0x1c0] sm:$0xff]  ;;  %v2202_v3 = vand.u32 4294901760, %v80_v0 }
   0x3   :  { %v72_v2 = vld [vmem:[%s3676_s0 + $0x1a0] sm:$0xff]  ;;  %v2204_v4 = vand.u32 4294901760, %v76_v1 }
   0x4   :  { %v2206_v5 = vand.u32 4294901760, %v72_v2  ;;  %v68_v6 = vld [vmem:[%s3676_s0 + $0x180] sm:$0xff]  ;;  %85 = vmatpush.msra.mxu0 %v2202_v3  ;;  %v2231_v14 = vsub.f32 %v80_v0, %v2202_v3  ;;  %332 = vmatpush.msra.mxu3 %v2202_v3 }
   0x5   :  { %v64_v7 = vld [vmem:[%s3676_s0 + $0x160] sm:$0xff]  ;;  %v2217_v9 = vand.u32 4294901760, %v68_v6  ;;  %v2235_v15 = vsub.f32 %v76_v1, %v2204_v4 }
   0x6   :  { %v60_v8 = vld [vmem:[%s3676_s0 + $0x140] sm:$0xff]  ;;  %v2219_v10 = vand.u32 4294901760, %v64_v7  ;;  %v2238_v16 = vsub.f32 %v72_v2, %v2206_v5  ;;  %87 = vmatpush.msra.mxu0 %v2204_v4  ;;  %264 = vmatpush.msra.mxu2 %v2231_v14  ;;  %v3695_v22 = vand.u32 4294901760, %v2231_v14 }
   0x7   :  { %v2221_v11 = vand.u32 4294901760, %v60_v8  ;;  %v56_v12 = vld [vmem:[%s3676_s0 + $0x120] sm:$0xff]  ;;  %v2246_v19 = vsub.f32 %v68_v6, %v2217_v9  ;;  %v3693_v23 = vand.u32 4294901760, %v2235_v15  ;;  %334 = vmatpush.msra.mxu3 %v2204_v4  ;;  %v81_v6 = vld [vmem:[%s3676_s0 + $0x1e8] sm:$0xff] }
   0x8   :  { %v52_v13 = vld [vmem:[%s3676_s0 + $0x100] sm:$0xff]  ;;  %v2240_v17 = vand.u32 4294901760, %v56_v12  ;;  %v2249_v20 = vsub.f32 %v64_v7, %v2219_v10  ;;  %v3692_v24 = vand.u32 4294901760, %v2238_v16  ;;  %89 = vmatpush.msra.mxu0 %v2206_v5  ;;  %267 = vmatpush.msra.mxu2 %v2235_v15  ;;  %v152_v30 = vsub.f32 %v2231_v14, %v3695_v22 }
   0x9   :  { %v48_v18 = vld [vmem:[%s3676_s0 + $0xe0] sm:$0xff]  ;;  %v2252_v21 = vsub.f32 %v60_v8, %v2221_v11  ;;  %v2259_v25 = vand.u32 4294901760, %v52_v13  ;;  %v3691_v27 = vand.u32 4294901760, %v2246_v19  ;;  %v158_v31 = vsub.f32 %v2235_v15, %v3693_v23  ;;  %336 = vmatpush.msra.mxu3 %v2206_v5 }
   0xa   :  { %v44_v26 = vld [vmem:[%s3676_s0 + $0xc0] sm:$0xff]  ;;  %v2266_v28 = vand.u32 4294901760, %v48_v18  ;;  %v2269_v29 = vsub.f32 %v56_v12, %v2240_v17  ;;  %v164_v32 = vsub.f32 %v2238_v16, %v3692_v24  ;;  %v3689_v33 = vand.u32 4294901760, %v2249_v20  ;;  %91 = vmatpush.msra.mxu0 %v2217_v9  ;;  %270 = vmatpush.msra.mxu2 %v2238_v16 }
   0xb   :  { %v40_v34 = vld [vmem:[%s3676_s0 + $0xa0] sm:$0xff]  ;;  %v2287_v35 = vand.u32 4294901760, %v44_v26  ;;  %v3688_v36 = vand.u32 4294901760, %v2252_v21  ;;  %v153_v37 = vand.u32 4294901760, %v152_v30  ;;  %v159_v38 = vand.u32 4294901760, %v158_v31  ;;  %338 = vmatpush.msra.mxu3 %v2217_v9  ;;  %v77_v31 = vld [vmem:[%s3676_s0 + $0x1c8] sm:$0xff] }
   0xc   :  { %v170_v39 = vsub.f32 %v2246_v19, %v3691_v27  ;;  %v2296_v40 = vsub.f32 %v52_v13, %v2259_v25  ;;  %v2299_v41 = vand.u32 4294901760, %v40_v34  ;;  %v3687_v42 = vand.u32 4294901760, %v2269_v29  ;;  %v36_v43 = vld [vmem:[%s3676_s0 + $0x80] sm:$0xff]  ;;  %93 = vmatpush.msra.mxu0 %v2219_v10  ;;  %273 = vmatpush.msra.mxu2 %v2246_v19 }
   0xd   :  { %154 = vmatpush.msra.mxu1 %v153_v37  ;;  %v165_v44 = vand.u32 4294901760, %v164_v32  ;;  %v176_v45 = vsub.f32 %v2249_v20, %v3689_v33  ;;  %v2310_v46 = vsub.f32 %v48_v18, %v2266_v28  ;;  %340 = vmatpush.msra.mxu3 %v2219_v10  ;;  %v182_v47 = vsub.f32 %v2252_v21, %v3688_v36  ;;  %v32_v49 = vld [vmem:[%s3676_s0 + $0x60] sm:$0xff]  ;;  %v17_v37 = vld [vmem:[%s3677_s1 + $0x8] sm:$0xff] }
   0xe   :  { %v2318_v48 = vsub.f32 %v44_v26, %v2287_v35  ;;  %95 = vmatpush.msra.mxu0 %v2221_v11  ;;  %v171_v50 = vand.u32 4294901760, %v170_v39  ;;  %v2324_v51 = vand.u32 4294901760, %v36_v43  ;;  %v3685_v52 = vand.u32 4294901760, %v2296_v40  ;;  %276 = vmatpush.msra.mxu2 %v2249_v20  ;;  %v28_v55 = vld [vmem:[%s3676_s0 + $0x40] sm:$0xff]  ;;  %v61_v36 = vld [vmem:[%s3676_s0 + $0x148] sm:$0xff] }
   0xf   :  { %160 = vmatpush.msra.mxu1 %v159_v38  ;;  %342 = vmatpush.msra.mxu3 %v2221_v11  ;;  %v188_v53 = vsub.f32 %v2269_v29, %v3687_v42  ;;  %v2333_v54 = vsub.f32 %v40_v34, %v2299_v41  ;;  %v16_v56 = vld [vmem:[%s3677_s1] sm:$0xff]  ;;  %v177_v57 = vand.u32 4294901760, %v176_v45  ;;  %v2342_v58 = vand.u32 4294901760, %v32_v49 }
  0x10   :  { %97 = vmatpush.msra.mxu0 %v2240_v17  ;;  %v3684_v59 = vand.u32 4294901760, %v2310_v46  ;;  %279 = vmatpush.msra.mxu2 %v2252_v21  ;;  %v183_v60 = vand.u32 4294901760, %v182_v47  ;;  %v3682_v61 = vand.u32 4294901760, %v2318_v48  ;;  %v24_v62 = vld [vmem:[%s3676_s0 + $0x20] sm:$0xff]  ;;  %v194_v63 = vsub.f32 %v2296_v40, %v3685_v52 }
  0x11   :  { %166 = vmatpush.msra.mxu1 %v165_v44  ;;  %344 = vmatpush.msra.mxu3 %v2240_v17  ;;  %v2355_v0 = vand.u32 4294901760, %v28_v55  ;;  %v2358_v1 = vsub.f32 %v36_v43, %v2324_v51  ;;  %v2360_v2 = vand.u32 4294901760, %v16_v56  ;;  %v189_v7 = vand.u32 4294901760, %v188_v53  ;;  %v20_v12 = vld [vmem:[%s3676_s0] sm:$0xff] }
  0x12   :  { %99 = vmatpush.msra.mxu0 %v2259_v25  ;;  %282 = vmatpush.msra.mxu2 %v2269_v29  ;;  %v3681_v8 = vand.u32 4294901760, %v2333_v54  ;;  %v200_v13 = vsub.f32 %v2310_v46, %v3684_v59  ;;  %v2375_v18 = vand.u32 4294901760, %v24_v62  ;;  %v2378_v26 = vsub.f32 %v32_v49, %v2342_v58 }
  0x13   :  { %172 = vmatpush.msra.mxu1 %v171_v50  ;;  %3760 = vst [vmem:[#allocation2_spill] sm:$0xff] %v2355_v0  ;;  %346 = vmatpush.msra.mxu3 %v2259_v25  ;;  %v2381_v30 = vsub.f32 %v16_v56, %v2360_v2  ;;  %v206_v32 = vsub.f32 %v2318_v48, %v3682_v61  ;;  %v2391_v34 = vand.u32 4294901760, %v81_v6  ;;  %v195_v38 = vand.u32 4294901760, %v194_v63  ;;  %v73_v50 = vld [vmem:[%s3676_s0 + $0x1a8] sm:$0xff] }
  0x14   :  { %101 = vmatpush.msra.mxu0 %v2266_v28  ;;  %3761 = vst [vmem:[#allocation3_spill] sm:$0xff] %v2375_v18  ;;  %285 = vmatpush.msra.mxu2 %v2296_v40  ;;  %v2397_v39 = vand.u32 4294901760, %v20_v12  ;;  %v3683_v43 = vand.u32 4294901760, %v2358_v1  ;;  %v2401_v44 = vsub.f32 %v28_v55, %v2355_v0  ;;  %v212_v45 = vsub.f32 %v2333_v54, %v3681_v8 }
  0x15   :  { %178 = vmatpush.msra.mxu1 %v177_v57  ;;  %3762 = vst [vmem:[#allocation4_spill] sm:$0xff] %v2381_v30  ;;  %348 = vmatpush.msra.mxu3 %v2266_v28  ;;  %v2409_v47 = vand.u32 4294901760, %v2381_v30  ;;  %v2411_v49 = vand.u32 4294901760, %v77_v31  ;;  %v201_v53 = vand.u32 4294901760, %v200_v13  ;;  %v3686_v55 = vand.u32 4294901760, %v2378_v26 }
  0x16   :  { %103 = vmatpush.msra.mxu0 %v2287_v35  ;;  %288 = vmatpush.msra.mxu2 %v2310_v46  ;;  %v2419_v56 = vsub.f32 %v24_v62, %v2375_v18  ;;  %v2421_v57 = vand.u32 4294901760, %v17_v37  ;;  %v2426_v63 = vsub.f32 %v81_v6, %v2391_v34  ;;  %v218_v62 = vsub.f32 %v2358_v1, %v3683_v43 }
  0x17   :  { %184 = vmatpush.msra.mxu1 %v183_v60  ;;  %350 = vmatpush.msra.mxu3 %v2287_v35  ;;  %3763 = vst [vmem:[#allocation5_spill] sm:$0xff] %v2409_v47  ;;  %v207_v60 = vand.u32 4294901760, %v206_v32  ;;  %v3690_v13 = vand.u32 4294901760, %v2401_v44  ;;  %v2437_v8 = vsub.f32 %v20_v12, %v2397_v39  ;;  %v2439_v32 = vand.u32 4294901760, %v73_v50 }
  0x18   :  { %105 = vmatpush.msra.mxu0 %v2299_v41  ;;  %291 = vmatpush.msra.mxu2 %v2318_v48  ;;  %3764 = vst [vmem:[#allocation6_spill] sm:$0xff] %v2426_v63  ;;  %v213_v6 = vand.u32 4294901760, %v212_v45  ;;  %v119_v61 = vsub.f32 %v2381_v30, %v2409_v47  ;;  %v224_v12 = vsub.f32 %v2378_v26, %v3686_v55  ;;  %v3694_v43 = vand.u32 4294901760, %v2419_v56  ;;  %v65_v45 = vld [vmem:[%s3676_s0 + $0x168] sm:$0xff] }
  0x19   :  { %190 = vmatpush.msra.mxu1 %v189_v7  ;;  %352 = vmatpush.msra.mxu3 %v2299_v41  ;;  %v69_v7 = vld [vmem:[%s3676_s0 + $0x188] sm:$0xff]  ;;  %v2454_v59 = vsub.f32 %v17_v37, %v2421_v57  ;;  %v230_v37 = vsub.f32 %v2401_v44, %v3690_v13  ;;  %v3699_v55 = vand.u32 4294901760, %v2437_v8  ;;  %v2470_v42 = vsub.f32 %v73_v50, %v2439_v32  ;;  %v18_v13 = vld [vmem:[%s3677_s1 + $0x10] sm:$0xff] }
  0x1a   :  { %107 = vmatpush.msra.mxu0 %v2324_v51  ;;  %294 = vmatpush.msra.mxu2 %v2333_v54  ;;  %v2456_v52 = vand.u32 4294901760, %v69_v7  ;;  %v2477_v33 = vand.u32 4294901760, %v119_v61  ;;  %v225_v50 = vand.u32 4294901760, %v224_v12  ;;  %v236_v27 = vsub.f32 %v2419_v56, %v3694_v43  ;;  %v57_v12 = vld [vmem:[%s3676_s0 + $0x128] sm:$0xff] }
  0x1b   :  { %196 = vmatpush.msra.mxu1 %v195_v38  ;;  %354 = vmatpush.msra.mxu3 %v2324_v51  ;;  %v2446_v38 = vsub.f32 %v77_v31, %v2411_v49  ;;  %3766 = vst [vmem:[#allocation8_spill] sm:$0xff] %v2454_v59  ;;  %v3696_v31 = vand.u32 4294901760, %v2426_v63  ;;  %v2490_v24 = vand.u32 4294901760, %v2454_v59  ;;  %v231_v43 = vand.u32 4294901760, %v230_v37 }
  0x1c   :  { %109 = vmatpush.msra.mxu0 %v2342_v58  ;;  %297 = vmatpush.msra.mxu2 %v2358_v1  ;;  %3767 = vst [vmem:[#allocation9_spill] sm:$0xff] %v2477_v33  ;;  %v2493_v61 = vsub.f32 %v69_v7, %v2456_v52  ;;  %v242_v7 = vsub.f32 %v2437_v8, %v3699_v55  ;;  %v3770_v37 = vand.u32 4294901760, %v2231_v14  ;;  %v237_v55 = vand.u32 4294901760, %v236_v27 }
  0x1d   :  { %3765 = vst [vmem:[#allocation7_spill] sm:$0xff] %v2446_v38  ;;  %202 = vmatpush.msra.mxu1 %v201_v53  ;;  %356 = vmatpush.msra.mxu3 %v2342_v58  ;;  %v219_v53 = vand.u32 4294901760, %v218_v62  ;;  %v2480_v62 = vand.u32 4294901760, %v65_v45  ;;  %v586_v23 = vsub.f32 %v2426_v63, %v3696_v31  ;;  %v3769_v31 = vand.u32 4294901760, %v2446_v38 }
  0x1e   :  { %111 = vmatpush.msra.mxu0 %v2355_v0  ;;  %300 = vmatpush.msra.mxu2 %v2378_v26  ;;  %3768 = vst [vmem:[#allocation10_spill] sm:$0xff] %v2490_v24  ;;  %v127_v22 = vsub.f32 %v2454_v59, %v2490_v24  ;;  %v2528_v63 = vand.u32 4294901760, %v57_v12  ;;  %v3772_v14 = vand.u32 4294901760, %v2235_v15  ;;  %v243_v27 = vand.u32 4294901760, %v242_v7 }
  0x1f   :  { %208 = vmatpush.msra.mxu1 %v207_v60  ;;  %358 = vmatpush.msra.mxu3 %v2355_v0  ;;  %v2510_v60 = vand.u32 4294901760, %v18_v13  ;;  %v2518_v0 = vsub.f32 %v65_v45, %v2480_v62  ;;  %v587_v45 = vand.u32 4294901760, %v586_v23  ;;  %v49_v23 = vld [vmem:[%s3676_s0 + $0xe8] sm:$0xff] }
  0x20   :  { %113 = vmatpush.msra.mxu0 %v2375_v18  ;;  %303 = vmatpush.msra.mxu2 %v2401_v44 }
  0x21   :  { %214 = vmatpush.msra.mxu1 %v213_v6  ;;  %360 = vmatpush.msra.mxu3 %v2375_v18  ;;  %v2500_v6 = vand.u32 4294901760, %v61_v36  ;;  %v592_v18 = vsub.f32 %v2446_v38, %v3769_v31 }
  0x22   :  { %115 = vmatpush.msra.mxu0 %v2397_v39  ;;  %306 = vmatpush.msra.mxu2 %v2419_v56 }
  0x23   :  { %220 = vmatpush.msra.mxu1 %v219_v53  ;;  %121 = vmatmul.f32.vlgmr.msra.gmra.mxu0 %v2477_v33  ;;  %v53_v53 = vld [vmem:[%s3676_s0 + $0x108] sm:$0xff]  ;;  %v2533_v31 = vsub.f32 %v61_v36, %v2500_v6  ;;  %v2541_v33 = vsub.f32 %v18_v13, %v2510_v60  ;;  %v593_v15 = vand.u32 4294901760, %v592_v18  ;;  %v3775_v13 = vand.u32 4294901760, %v2493_v61 }
  0x24   :  { %391 = vmatpush.msrb.mxu0 %v3770_v37  ;;  %309 = vmatpush.msra.mxu2 %v2437_v8  ;;  %v2543_v38 = vand.u32 4294901760, %v53_v53  ;;  %v3776_v18 = vand.u32 4294901760, %v2238_v16  ;;  %v3778_v16 = vand.u32 4294901760, %v2246_v19 }
  0x25   :  { %226 = vmatpush.msra.mxu1 %v225_v50  ;;  %362 = vmatpush.msra.mxu3 %v2397_v39  ;;  %3771 = vst [vmem:[#allocation11_spill] sm:$0xff] %v2533_v31  ;;  %v3773_v50 = vand.u32 4294901760, %v2470_v42  ;;  %v604_v7 = vsub.f32 %v2493_v61, %v3775_v13  ;;  %v2573_v13 = vand.u32 4294901760, %v2541_v33 }
  0x26   :  { %395 = vmatpush.msrb.mxu0 %v3772_v14  ;;  %312 = vmatmul.f32.vlgmr.msra.gmra.mxu2 %v2381_v30  ;;  %v2558_v14 = vsub.f32 %v57_v12, %v2528_v63  ;;  %v37_v30 = vld [vmem:[%s3676_s0 + $0x88] sm:$0xff] }
  0x27   :  { %232 = vmatpush.msra.mxu1 %v231_v43  ;;  %v598_v37 = vsub.f32 %v2470_v42, %v3773_v50  ;;  %366 = vmatmul.f32.vlgmr.msra.gmra.mxu3 %v2409_v47  ;;  %v2552_v43 = vand.u32 4294901760, %v127_v22  ;;  %v45_v50 = vld [vmem:[%s3676_s0 + $0xc8] sm:$0xff]  ;;  %v19_v22 = vld [vmem:[%s3677_s1 + $0x18] sm:$0xff]  ;;  %3777 = vst [vmem:[#allocation13_spill] sm:$0xff] %v2573_v13  ;;  %v2576_v47 = vsub.f32 %v53_v53, %v2543_v38  ;;  %v605_v53 = vand.u32 4294901760, %v604_v7 }
  0x28   :  { %519 = vmatpush.msrb.mxu2 %v2391_v34  ;;  %399 = vmatpush.msrb.mxu0 %v3776_v18  ;;  %v2583_v36 = vand.u32 4294901760, %v45_v50  ;;  %v2591_v19 = vand.u32 4294901760, %v19_v22  ;;  %v3782_v7 = vand.u32 4294901760, %v2249_v20  ;;  %v3784_v20 = vand.u32 4294901760, %v2558_v14 }
  0x29   :  { %238 = vmatpush.msra.mxu1 %v237_v55  ;;  %3774 = vst [vmem:[#allocation12_spill] sm:$0xff] %v2552_v43  ;;  %588 = vmatpush.msrb.mxu3 %v587_v45  ;;  %v2566_v55 = vand.u32 4294901760, %v49_v23  ;;  %v599_v12 = vand.u32 4294901760, %v598_v37  ;;  %v3779_v45 = vand.u32 4294901760, %v2518_v0  ;;  %v2624_v37 = vand.u32 4294901760, %v37_v30 }
  0x2a   :  { %521 = vmatpush.msrb.mxu2 %v2411_v49  ;;  %403 = vmatpush.msrb.mxu0 %v3778_v16  ;;  %3780 = vst [vmem:[#allocation14_spill] sm:$0xff] %v2591_v19 }
  0x2b   :  { %244 = vmatpush.msra.mxu1 %v243_v27  ;;  %594 = vmatpush.msrb.mxu3 %v593_v15  ;;  %v610_v18 = vsub.f32 %v2518_v0, %v3779_v45  ;;  %v41_v27 = vld [vmem:[%s3676_s0 + $0xa8] sm:$0xff]  ;;  %v3781_v15 = vand.u32 4294901760, %v2533_v31  ;;  %v2599_v45 = vsub.f32 %v49_v23, %v2566_v55 }
  0x2c   :  { %129 = vmatmul.f32.gmra.mxu0 %v2552_v43  ;;  %246 = vmatmul.f32.vlgmr.msra.gmra.mxu1 %v2360_v2  ;;  %v2609_v43 = vand.u32 4294901760, %v41_v27 }
  0x2d   :  { %470 = vmatpush.msrb.mxu1 %v2202_v3  ;;  %523 = vmatpush.msrb.mxu2 %v2439_v32  ;;  %v616_v16 = vsub.f32 %v2533_v31, %v3781_v15  ;;  %v135_v3 = vsub.f32 %v2541_v33, %v2573_v13  ;;  %v611_v23 = vand.u32 4294901760, %v610_v18  ;;  %v2614_v15 = vsub.f32 %v45_v50, %v2583_v36 }
  0x2e   :  { %407 = vmatpush.msrb.mxu0 %v3782_v7  ;;  %600 = vmatpush.msrb.mxu3 %v599_v12  ;;  %v3783_v31 = vand.u32 4294901760, %v2252_v21  ;;  %v622_v12 = vsub.f32 %v2558_v14, %v3784_v20  ;;  %v2622_v7 = vsub.f32 %v19_v22, %v2591_v19  ;;  %v3787_v22 = vand.u32 4294901760, %v2576_v47  ;;  %v29_v20 = vld [vmem:[%s3676_s0 + $0x48] sm:$0xff] }
  0x2f   :  { %472 = vmatpush.msrb.mxu1 %v2204_v4  ;;  %525 = vmatpush.msrb.mxu2 %v2456_v52  ;;  %v33_v4 = vld [vmem:[%s3676_s0 + $0x68] sm:$0xff]  ;;  %v617_v21 = vand.u32 4294901760, %v616_v16  ;;  %v2634_v50 = vand.u32 4294901760, %v135_v3  ;;  %v3788_v16 = vand.u32 4294901760, %v2269_v29  ;;  %v3791_v29 = vand.u32 4294901760, %v2599_v45 }
  0x30   :  { %411 = vmatpush.msrb.mxu0 %v3783_v31  ;;  %606 = vmatpush.msrb.mxu3 %v605_v53  ;;  %3785 = vst [vmem:[#allocation15_spill] sm:$0xff] %v2622_v7  ;;  %v628_v18 = vsub.f32 %v2576_v47, %v3787_v22  ;;  %v2640_v53 = vsub.f32 %v41_v27, %v2609_v43  ;;  %v2648_v31 = vand.u32 4294901760, %v33_v4  ;;  %v623_v3 = vand.u32 4294901760, %v622_v12 }
  0x31   :  { %317 = vmatmul.f32.gmra.mxu2 %v2454_v59  ;;  %372 = vmatmul.f32.gmra.mxu3 %v2490_v24  ;;  %3786 = vst [vmem:[#allocation16_spill] sm:$0xff] %v2634_v50  ;;  %v2653_v27 = vand.u32 4294901760, %v2622_v7  ;;  %v2656_v22 = vsub.f32 %v37_v30, %v2624_v37  ;;  %v3790_v24 = vand.u32 4294901760, %v2296_v40  ;;  %v3793_v59 = vand.u32 4294901760, %v2318_v48 }
  0x32   :  { %474 = vmatpush.msrb.mxu1 %v2206_v5  ;;  %527 = vmatpush.msrb.mxu2 %v2480_v62  ;;  %v3716_v5 = vand.u32 4294901760, %v2614_v15  ;;  %v629_v30 = vand.u32 4294901760, %v628_v18  ;;  %v2677_v40 = vsub.f32 %v33_v4, %v2648_v31 }
  0x33   :  { %415 = vmatpush.msrb.mxu0 %v3788_v16  ;;  %612 = vmatpush.msrb.mxu3 %v611_v23  ;;  %3789 = vst [vmem:[#allocation17_spill] sm:$0xff] %v2653_v27  ;;  %v634_v23 = vsub.f32 %v2599_v45, %v3791_v29  ;;  %v2663_v16 = vand.u32 4294901760, %v29_v20  ;;  %v3792_v29 = vand.u32 4294901760, %v2310_v46  ;;  %v651_v18 = vand.u32 4294901760, %v2656_v22 }
  0x34   :  { %476 = vmatpush.msrb.mxu1 %v2217_v9  ;;  %529 = vmatpush.msrb.mxu2 %v2500_v6  ;;  %v25_v9 = vld [vmem:[%s3676_s0 + $0x28] sm:$0xff]  ;;  %v3794_v46 = vand.u32 4294901760, %v2640_v53 }
  0x35   :  { %419 = vmatpush.msrb.mxu0 %v3790_v24  ;;  %618 = vmatpush.msrb.mxu3 %v617_v21  ;;  %v640_v24 = vsub.f32 %v2614_v15, %v3716_v5  ;;  %v21_v21 = vld [vmem:[%s3676_s0 + $0x8] sm:$0xff]  ;;  %v2687_v12 = vand.u32 4294901760, %v25_v9  ;;  %v635_v4 = vand.u32 4294901760, %v634_v23  ;;  %v2692_v5 = vsub.f32 %v29_v20, %v2663_v16 }
  0x36   :  { %137 = vmatmul.f32.gmra.mxu0 %v2634_v50  ;;  %250 = vmatmul.f32.gmra.mxu1 %v2421_v57  ;;  %v657_v23 = vand.u32 4294901760, %v2677_v40 }
  0x37   :  { %478 = vmatpush.msrb.mxu1 %v2219_v10  ;;  %531 = vmatpush.msrb.mxu2 %v2528_v63  ;;  %v143_v10 = vsub.f32 %v2622_v7, %v2653_v27  ;;  %v2712_v20 = vsub.f32 %v25_v9, %v2687_v12 }
  0x38   :  { %423 = vmatpush.msrb.mxu0 %v3792_v29  ;;  %624 = vmatpush.msrb.mxu3 %v623_v3  ;;  %v646_v3 = vsub.f32 %v2640_v53, %v3794_v46  ;;  %v2699_v29 = vand.u32 4294901760, %v21_v21  ;;  %v3796_v46 = vand.u32 4294901760, %v2358_v1 }
  0x39   :  { %480 = vmatpush.msrb.mxu1 %v2221_v11  ;;  %533 = vmatpush.msrb.mxu2 %v2543_v38  ;;  %v641_v11 = vand.u32 4294901760, %v640_v24  ;;  %v2706_v48 = vand.u32 4294901760, %v143_v10  ;;  %v663_v24 = vand.u32 4294901760, %v2692_v5 }
  0x3a   :  { %427 = vmatpush.msrb.mxu0 %v3793_v59  ;;  %630 = vmatpush.msrb.mxu3 %v629_v30  ;;  %v652_v59 = vsub.f32 %v2656_v22, %v651_v18  ;;  %v3795_v30 = vand.u32 4294901760, %v2333_v54  ;;  %v2720_v10 = vsub.f32 %v21_v21, %v2699_v29  ;;  %v658_v54 = vsub.f32 %v2677_v40, %v657_v23 }
  0x3b   :  { %322 = vmatmul.f32.gmra.mxu2 %v2541_v33  ;;  %378 = vmatmul.f32.gmra.mxu3 %v2573_v13  ;;  %v664_v1 = vsub.f32 %v2692_v5, %v663_v24  ;;  %v3797_v21 = vand.u32 4294901760, %v2378_v26 }
  0x3c   :  { %482 = vmatpush.msrb.mxu1 %v2240_v17  ;;  %535 = vmatpush.msrb.mxu2 %v2566_v55  ;;  %v647_v17 = vand.u32 4294901760, %v646_v3  ;;  %v653_v9 = vand.u32 4294901760, %v652_v59  ;;  %v659_v3 = vand.u32 4294901760, %v658_v54 }
  0x3d   :  { %431 = vmatpush.msrb.mxu0 %v3795_v30  ;;  %636 = vmatpush.msrb.mxu3 %v635_v4  ;;  %v675_v4 = vand.u32 4294901760, %v2720_v10  ;;  %v665_v26 = vand.u32 4294901760, %v664_v1  ;;  %v3800_v30 = vand.u32 4294901760, %v2437_v8  ;;  %v3803_v8 = vld [vmem:[#allocation7_spill] sm:$0xff] }
  0x3e   :  { %484 = vmatpush.msrb.mxu1 %v2259_v25  ;;  %537 = vmatpush.msrb.mxu2 %v2583_v36  ;;  %v669_v25 = vand.u32 4294901760, %v2712_v20  ;;  %v3807_v54 = vand.u32 4294901760, %v3803_v8  ;;  %v3810_v1 = vld [vmem:[#allocation11_spill] sm:$0xff] }
  0x3f   :  { %435 = vmatpush.msrb.mxu0 %v3796_v46  ;;  %642 = vmatpush.msrb.mxu3 %v641_v11  ;;  %v3798_v11 = vand.u32 4294901760, %v2401_v44  ;;  %v3799_v44 = vand.u32 4294901760, %v2419_v56  ;;  %v3801_v56 = vld [vmem:[#allocation6_spill] sm:$0xff]  ;;  %v3805_v46 = vld [vmem:[#allocation9_spill] sm:$0xff] }
  0x40   :  { %145 = vmatmul.f32.gmra.mxu0 %v2706_v48  ;;  %254 = vmatmul.f32.gmra.mxu1 %v2510_v60 }
  0x41   :  { %486 = vmatpush.msrb.mxu1 %v2266_v28  ;;  %539 = vmatpush.msrb.mxu2 %v2609_v43  ;;  %v670_v28 = vsub.f32 %v2712_v20, %v669_v25 }
  0x42   :  { %439 = vmatpush.msrb.mxu0 %v3797_v21  ;;  %648 = vmatpush.msrb.mxu3 %v647_v17  ;;  %v3804_v17 = vld [vmem:[#allocation3_spill] sm:$0xff]  ;;  %v3811_v21 = vld [vmem:[#allocation12_spill] sm:$0xff] }
  0x43   :  { %488 = vmatpush.msrb.mxu1 %v2287_v35  ;;  %541 = vmatpush.msrb.mxu2 %v2624_v37  ;;  %v676_v35 = vsub.f32 %v2720_v10, %v675_v4  ;;  %v671_v59 = vand.u32 4294901760, %v670_v28 }
  0x44   :  { %443 = vmatpush.msrb.mxu0 %v3798_v11  ;;  %654 = vmatpush.msrb.mxu3 %v653_v9  ;;  %v3808_v9 = vand.u32 4294901760, %v2470_v42 }
  0x45   :  { %327 = vmatmul.f32.gmra.mxu2 %v2622_v7  ;;  %384 = vmatmul.f32.gmra.mxu3 %v2653_v27 }
  0x46   :  { %490 = vmatpush.msrb.mxu1 %v2299_v41  ;;  %543 = vmatpush.msrb.mxu2 %v2648_v31  ;;  %v677_v41 = vand.u32 4294901760, %v676_v35 }
  0x47   :  { %447 = vmatpush.msrb.mxu0 %v3799_v44  ;;  %660 = vmatpush.msrb.mxu3 %v659_v3  ;;  %v50_v44 = vld [vmem:[%s3676_s0 + $0xf0] sm:$0xff] }
  0x48   :  { %492 = vmatpush.msrb.mxu1 %v2324_v51  ;;  %545 = vmatpush.msrb.mxu2 %v2663_v16  ;;  %v3802_v51 = vld [vmem:[#allocation2_spill] sm:$0xff] }
  0x49   :  { %451 = vmatpush.msrb.mxu0 %v3800_v30  ;;  %666 = vmatpush.msrb.mxu3 %v665_v26 }
  0x4a   :  { %258 = vmatmul.f32.gmra.mxu1 %v2591_v19  ;;  %453 = vmatmul.f32.vlgmr.msrb.gmra.mxu0 %v2360_v2 }
  0x4b   :  { %494 = vmatpush.msrb.mxu1 %v2342_v58  ;;  %547 = vmatpush.msrb.mxu2 %v2687_v12  ;;  %v3806_v58 = vand.u32 4294901760, %v3801_v56 }
  0x4c   :  { %672 = vmatpush.msrb.mxu3 %v671_v59  ;;  %698 = vmatpush.msra.mxu0 %v3801_v56 }
  0x4d   :  { %496 = vmatpush.msrb.mxu1 %v3802_v51  ;;  %549 = vmatpush.msrb.mxu2 %v2699_v29 }
  0x4e   :  { %678 = vmatpush.msrb.mxu3 %v677_v41  ;;  %701 = vmatpush.msra.mxu0 %v3803_v8  ;;  %v3821_v41 = vld [vmem:[#allocation5_spill] sm:$0xff]  ;;  %v46_v8 = vld [vmem:[%s3676_s0 + $0xd0] sm:$0xff] }
  0x4f   :  { %498 = vmatpush.msrb.mxu1 %v3804_v17  ;;  %555 = vmatmul.f32.vlgmr.msrb.gmra.mxu2 %v3805_v46  ;;  %v2959_v17 = vand.u32 4294901760, %v50_v44 }
  0x50   :  { %680 = vmatmul.f32.vlgmr.msrb.gmra.mxu3 %v2360_v2  ;;  %825 = vmatpush.msra.mxu2 %v3806_v58 }
  0x51   :  { %704 = vmatpush.msra.mxu0 %v2470_v42  ;;  %904 = vmatpush.msra.mxu3 %v2391_v34  ;;  %v3812_v42 = vand.u32 4294901760, %v2518_v0 }
  0x52   :  { %500 = vmatpush.msrb.mxu1 %v2397_v39  ;;  %829 = vmatpush.msra.mxu2 %v3807_v54  ;;  %v3809_v39 = vand.u32 4294901760, %v2493_v61 }
  0x53   :  { %707 = vmatpush.msra.mxu0 %v2493_v61  ;;  %906 = vmatpush.msra.mxu3 %v2411_v49 }
  0x54   :  { %457 = vmatmul.f32.gmra.mxu0 %v2421_v57  ;;  %502 = vmatmul.f32.vlgmr.msrb.gmra.mxu1 %v2360_v2 }
  0x55   :  { %766 = vmatpush.msra.mxu1 %v2391_v34  ;;  %833 = vmatpush.msra.mxu2 %v3808_v9  ;;  %v3813_v34 = vand.u32 4294901760, %v3810_v1 }
  0x56   :  { %710 = vmatpush.msra.mxu0 %v2518_v0  ;;  %908 = vmatpush.msra.mxu3 %v2439_v32  ;;  %v3814_v0 = vand.u32 4294901760, %v2558_v14 }
  0x57   :  { %768 = vmatpush.msra.mxu1 %v2411_v49  ;;  %837 = vmatpush.msra.mxu2 %v3809_v39  ;;  %v3816_v49 = vand.u32 4294901760, %v2599_v45 }
  0x58   :  { %713 = vmatpush.msra.mxu0 %v3810_v1  ;;  %910 = vmatpush.msra.mxu3 %v2456_v52  ;;  %v2971_v1 = vand.u32 4294901760, %v46_v8 }
  0x59   :  { %563 = vmatmul.f32.gmra.mxu2 %v3811_v21  ;;  %684 = vmatmul.f32.gmra.mxu3 %v2421_v57 }
  0x5a   :  { %770 = vmatpush.msra.mxu1 %v2439_v32  ;;  %841 = vmatpush.msra.mxu2 %v3812_v42  ;;  %v82_v32 = vld [vmem:[%s3676_s0 + $0x1f0] sm:$0xff] }
  0x5b   :  { %716 = vmatpush.msra.mxu0 %v2558_v14  ;;  %912 = vmatpush.msra.mxu3 %v2480_v62  ;;  %v42_v42 = vld [vmem:[%s3676_s0 + $0xb0] sm:$0xff] }
  0x5c   :  { %772 = vmatpush.msra.mxu1 %v2456_v52  ;;  %845 = vmatpush.msra.mxu2 %v3813_v34  ;;  %v3815_v52 = vand.u32 4294901760, %v2576_v47 }
  0x5d   :  { %719 = vmatpush.msra.mxu0 %v2576_v47  ;;  %914 = vmatpush.msra.mxu3 %v2500_v6  ;;  %v3817_v47 = vand.u32 4294901760, %v2614_v15 }
  0x5e   :  { %461 = vmatmul.f32.gmra.mxu0 %v2510_v60  ;;  %506 = vmatmul.f32.gmra.mxu1 %v2421_v57 }
  0x5f   :  { %774 = vmatpush.msra.mxu1 %v2480_v62  ;;  %849 = vmatpush.msra.mxu2 %v3814_v0  ;;  %v2837_v62 = vand.u32 4294901760, %v82_v32 }
  0x60   :  { %722 = vmatpush.msra.mxu0 %v2599_v45  ;;  %916 = vmatpush.msra.mxu3 %v2528_v63 }
  0x61   :  { %776 = vmatpush.msra.mxu1 %v2500_v6  ;;  %853 = vmatpush.msra.mxu2 %v3815_v52  ;;  %v74_v6 = vld [vmem:[%s3676_s0 + $0x1b0] sm:$0xff]  ;;  %v2854_v14 = vsub.f32 %v82_v32, %v2837_v62  ;;  %v2991_v32 = vand.u32 4294901760, %v42_v42 }
  0x62   :  { %725 = vmatpush.msra.mxu0 %v2614_v15  ;;  %918 = vmatpush.msra.mxu3 %v2543_v38 }
  0x63   :  { %571 = vmatmul.f32.gmra.mxu2 %v2634_v50  ;;  %688 = vmatmul.f32.gmra.mxu3 %v2510_v60  ;;  %3822 = vst [vmem:[#allocation6_spill] sm:$0xff] %v2991_v32 }
  0x64   :  { %778 = vmatpush.msra.mxu1 %v2528_v63  ;;  %857 = vmatpush.msra.mxu2 %v3816_v49  ;;  %v78_v63 = vld [vmem:[%s3676_s0 + $0x1d0] sm:$0xff]  ;;  %v2985_v49 = vsub.f32 %v50_v44, %v2959_v17 }
  0x65   :  { %728 = vmatpush.msra.mxu0 %v2640_v53  ;;  %920 = vmatpush.msra.mxu3 %v2566_v55  ;;  %v2844_v61 = vand.u32 4294901760, %v78_v63 }
  0x66   :  { %780 = vmatpush.msra.mxu1 %v2543_v38  ;;  %861 = vmatpush.msra.mxu2 %v3817_v47  ;;  %v3818_v38 = vand.u32 4294901760, %v2640_v53  ;;  %v3729_v53 = vand.u32 4294901760, %v2854_v14  ;;  %v38_v47 = vld [vmem:[%s3676_s0 + $0x90] sm:$0xff] }
  0x67   :  { %731 = vmatpush.msra.mxu0 %v2656_v22  ;;  %922 = vmatpush.msra.mxu3 %v2583_v36  ;;  %v2867_v45 = vsub.f32 %v78_v63, %v2844_v61  ;;  %v3819_v22 = vld [vmem:[#allocation4_spill] sm:$0xff] }
  0x68   :  { %465 = vmatmul.f32.gmra.mxu0 %v2591_v19  ;;  %510 = vmatmul.f32.gmra.mxu1 %v2510_v60 }
  0x69   :  { %782 = vmatpush.msra.mxu1 %v2566_v55  ;;  %865 = vmatpush.msra.mxu2 %v3818_v38  ;;  %v2862_v55 = vand.u32 4294901760, %v74_v6 }
  0x6a   :  { %734 = vmatpush.msra.mxu0 %v2677_v40  ;;  %924 = vmatpush.msra.mxu3 %v2609_v43 }
  0x6b   :  { %784 = vmatpush.msra.mxu1 %v2583_v36  ;;  %869 = vmatpush.msra.mxu2 %v651_v18  ;;  %v70_v36 = vld [vmem:[%s3676_s0 + $0x190] sm:$0xff]  ;;  %v3728_v18 = vand.u32 4294901760, %v2867_v45 }
  0x6c   :  { %737 = vmatpush.msra.mxu0 %v2692_v5  ;;  %926 = vmatpush.msra.mxu3 %v2624_v37  ;;  %v2872_v15 = vand.u32 4294901760, %v70_v36  ;;  %v62_v5 = vld [vmem:[%s3676_s0 + $0x150] sm:$0xff] }
  0x6d   :  { %579 = vmatmul.f32.gmra.mxu2 %v2706_v48  ;;  %692 = vmatmul.f32.gmra.mxu3 %v2591_v19 }
  0x6e   :  { %786 = vmatpush.msra.mxu1 %v2609_v43  ;;  %873 = vmatpush.msra.mxu2 %v657_v23  ;;  %v66_v43 = vld [vmem:[%s3676_s0 + $0x170] sm:$0xff]  ;;  %v2897_v23 = vsub.f32 %v70_v36, %v2872_v15 }
  0x6f   :  { %740 = vmatpush.msra.mxu0 %v2712_v20  ;;  %928 = vmatpush.msra.mxu3 %v2648_v31  ;;  %v2891_v40 = vand.u32 4294901760, %v66_v43  ;;  %v2905_v20 = vand.u32 4294901760, %v62_v5 }
  0x70   :  { %788 = vmatpush.msra.mxu1 %v2624_v37  ;;  %877 = vmatpush.msra.mxu2 %v663_v24  ;;  %v2883_v37 = vsub.f32 %v74_v6, %v2862_v55  ;;  %v58_v24 = vld [vmem:[%s3676_s0 + $0x130] sm:$0xff]  ;;  %v2997_v6 = vsub.f32 %v46_v8, %v2971_v1 }
  0x71   :  { %743 = vmatpush.msra.mxu0 %v2720_v10  ;;  %930 = vmatpush.msra.mxu3 %v2663_v16  ;;  %v2919_v10 = vsub.f32 %v66_v43, %v2891_v40  ;;  %v2926_v3 = vand.u32 4294901760, %v58_v24  ;;  %v2932_v28 = vsub.f32 %v62_v5, %v2905_v20  ;;  %v3003_v43 = vand.u32 4294901760, %v38_v47  ;;  %v34_v5 = vld [vmem:[%s3676_s0 + $0x70] sm:$0xff] }
  0x72   :  { %514 = vmatmul.f32.gmra.mxu1 %v2591_v19  ;;  %746 = vmatmul.f32.vlgmr.msra.gmra.mxu0 %v3819_v22  ;;  %v3023_v44 = vand.u32 4294901760, %v34_v5 }
  0x73   :  { %790 = vmatpush.msra.mxu1 %v2648_v31  ;;  %881 = vmatpush.msra.mxu2 %v669_v25  ;;  %v1020_v31 = vsub.f32 %v2854_v14, %v3729_v53  ;;  %v3727_v25 = vand.u32 4294901760, %v2883_v37  ;;  %v3724_v30 = vand.u32 4294901760, %v2919_v10  ;;  %v2953_v51 = vsub.f32 %v58_v24, %v2926_v3  ;;  %3823 = vst [vmem:[#allocation2_spill] sm:$0xff] %v3003_v43 }
  0x74   :  { %932 = vmatpush.msra.mxu3 %v2687_v12  ;;  %953 = vmatpush.msrb.mxu0 %v2837_v62  ;;  %v3723_v58 = vand.u32 4294901760, %v2932_v28  ;;  %v3719_v24 = vand.u32 4294901760, %v2985_v49  ;;  %3825 = vst [vmem:[#allocation7_spill] sm:$0xff] %v3023_v44  ;;  %v3029_v8 = vsub.f32 %v38_v47, %v3003_v43  ;;  %v83_v47 = vld [vmem:[%s3676_s0 + $0x1f8] sm:$0xff] }
  0x75   :  { %792 = vmatpush.msra.mxu1 %v2663_v16  ;;  %885 = vmatpush.msra.mxu2 %v675_v4  ;;  %v1026_v16 = vsub.f32 %v2867_v45, %v3728_v18  ;;  %v54_v4 = vld [vmem:[%s3676_s0 + $0x110] sm:$0xff]  ;;  %v1021_v11 = vand.u32 4294901760, %v1020_v31  ;;  %v1032_v26 = vsub.f32 %v2883_v37, %v3727_v25  ;;  %v1044_v39 = vsub.f32 %v2919_v10, %v3724_v30  ;;  %v71_v25 = vld [vmem:[%s3676_s0 + $0x198] sm:$0xff] }
  0x76   :  { %934 = vmatpush.msra.mxu3 %v2699_v29  ;;  %955 = vmatpush.msrb.mxu0 %v2844_v61  ;;  %v2939_v35 = vand.u32 4294901760, %v54_v4  ;;  %v3722_v0 = vand.u32 4294901760, %v2953_v51  ;;  %v1050_v52 = vsub.f32 %v2932_v28, %v3723_v58 }
  0x77   :  { %794 = vmatpush.msra.mxu1 %v2687_v12  ;;  %887 = vmatmul.f32.vlgmr.msra.gmra.mxu2 %v2360_v2  ;;  %v3725_v12 = vand.u32 4294901760, %v2897_v23  ;;  %v1027_v59 = vand.u32 4294901760, %v1026_v16  ;;  %v1033_v54 = vand.u32 4294901760, %v1032_v26  ;;  %v1045_v38 = vand.u32 4294901760, %v1044_v39  ;;  %v3824_v16 = vld [vmem:[#allocation10_spill] sm:$0xff]  ;;  %v30_v26 = vld [vmem:[%s3676_s0 + $0x50] sm:$0xff] }
  0x78   :  { %936 = vmatmul.f32.vlgmr.msra.gmra.mxu3 %v2360_v2  ;;  %1132 = vmatpush.msrb.mxu2 %v2854_v14  ;;  %v2965_v9 = vsub.f32 %v54_v4, %v2939_v35  ;;  %v1056_v36 = vsub.f32 %v2953_v51, %v3722_v0  ;;  %v1051_v31 = vand.u32 4294901760, %v1050_v52  ;;  %v1068_v39 = vsub.f32 %v2985_v49, %v3719_v24 }
  0x79   :  { %957 = vmatpush.msrb.mxu0 %v2862_v55  ;;  %1200 = vmatpush.msrb.mxu3 %v2837_v62  ;;  %v1038_v56 = vsub.f32 %v2897_v23, %v3725_v12  ;;  %v3730_v24 = vand.u32 4294901760, %v3029_v8  ;;  %v3069_v0 = vand.u32 4294901760, %v83_v47 }
  0x7a   :  { %796 = vmatpush.msra.mxu1 %v2699_v29  ;;  %1135 = vmatpush.msrb.mxu2 %v2867_v45  ;;  %v3820_v29 = vld [vmem:[#allocation8_spill] sm:$0xff]  ;;  %v3720_v63 = vand.u32 4294901760, %v2965_v9 }
  0x7b   :  { %959 = vmatpush.msrb.mxu0 %v2872_v15  ;;  %1202 = vmatpush.msrb.mxu3 %v2844_v61  ;;  %v1039_v34 = vand.u32 4294901760, %v1038_v56  ;;  %v1057_v56 = vand.u32 4294901760, %v1056_v36  ;;  %v3052_v36 = vsub.f32 %v34_v5, %v3023_v44  ;;  %v1069_v5 = vand.u32 4294901760, %v1068_v39 }
  0x7c   :  { %751 = vmatmul.f32.gmra.mxu0 %v3820_v29  ;;  %800 = vmatmul.f32.vlgmr.msra.gmra.mxu1 %v3821_v41  ;;  %v1062_v4 = vsub.f32 %v2965_v9, %v3720_v63  ;;  %v79_v63 = vld [vmem:[%s3676_s0 + $0x1d8] sm:$0xff] }
  0x7d   :  { %1022 = vmatpush.msrb.mxu1 %v1021_v11  ;;  %1138 = vmatpush.msrb.mxu2 %v2883_v37  ;;  %v3017_v11 = vsub.f32 %v42_v42, %v2991_v32  ;;  %v3038_v42 = vand.u32 4294901760, %v30_v26  ;;  %v3731_v39 = vand.u32 4294901760, %v3052_v36  ;;  %v3083_v12 = vand.u32 4294901760, %v79_v63 }
  0x7e   :  { %961 = vmatpush.msrb.mxu0 %v2891_v40  ;;  %1204 = vmatpush.msrb.mxu3 %v2862_v55 }
  0x7f   :  { %1028 = vmatpush.msrb.mxu1 %v1027_v59  ;;  %1141 = vmatpush.msrb.mxu2 %v2897_v23  ;;  %v3721_v59 = vand.u32 4294901760, %v2997_v6  ;;  %3826 = vst [vmem:[#allocation3_spill] sm:$0xff] %v3038_v42  ;;  %v3726_v52 = vand.u32 4294901760, %v3017_v11 }
  0x80   :  { %963 = vmatpush.msrb.mxu0 %v2905_v20  ;;  %1206 = vmatpush.msrb.mxu3 %v2872_v15 }
  0x81   :  { %891 = vmatmul.f32.gmra.mxu2 %v2421_v57  ;;  %940 = vmatmul.f32.gmra.mxu3 %v2421_v57 }
  0x82   :  { %1034 = vmatpush.msrb.mxu1 %v1033_v54  ;;  %1144 = vmatpush.msrb.mxu2 %v2919_v10  ;;  %v26_v54 = vld [vmem:[%s3676_s0 + $0x30] sm:$0xff] }
  0x83   :  { %965 = vmatpush.msrb.mxu0 %v2926_v3  ;;  %1208 = vmatpush.msrb.mxu3 %v2891_v40 }
  0x84   :  { %1040 = vmatpush.msrb.mxu1 %v1039_v34  ;;  %1147 = vmatpush.msrb.mxu2 %v2932_v28  ;;  %v1063_v34 = vand.u32 4294901760, %v1062_v4  ;;  %v22_v4 = vld [vmem:[%s3676_s0 + $0x10] sm:$0xff] }
  0x85   :  { %967 = vmatpush.msrb.mxu0 %v2939_v35  ;;  %1210 = vmatpush.msrb.mxu3 %v2905_v20  ;;  %v3075_v58 = vand.u32 4294901760, %v22_v4 }
  0x86   :  { %756 = vmatmul.f32.gmra.mxu0 %v2541_v33  ;;  %806 = vmatmul.f32.gmra.mxu1 %v3824_v16 }
  0x87   :  { %1046 = vmatpush.msrb.mxu1 %v1045_v38  ;;  %1150 = vmatpush.msrb.mxu2 %v2953_v51  ;;  %v1074_v38 = vsub.f32 %v2997_v6, %v3721_v59  ;;  %v3067_v59 = vsub.f32 %v30_v26, %v3038_v42  ;;  %v3104_v53 = vsub.f32 %v22_v4, %v3075_v58 }
  0x88   :  { %969 = vmatpush.msrb.mxu0 %v2959_v17  ;;  %1212 = vmatpush.msrb.mxu3 %v2926_v3 }
  0x89   :  { %1052 = vmatpush.msrb.mxu1 %v1051_v31  ;;  %1153 = vmatpush.msrb.mxu2 %v2965_v9  ;;  %v3054_v31 = vand.u32 4294901760, %v26_v54  ;;  %3828 = vst [vmem:[#allocation12_spill] sm:$0xff] %v3067_v59  ;;  %v1075_v30 = vand.u32 4294901760, %v1074_v38  ;;  %v3096_v38 = vsub.f32 %v83_v47, %v3069_v0  ;;  %v1092_v47 = vsub.f32 %v3052_v36, %v3731_v39 }
  0x8a   :  { %971 = vmatpush.msrb.mxu0 %v2971_v1  ;;  %1214 = vmatpush.msrb.mxu3 %v2939_v35  ;;  %v3830_v39 = vand.u32 4294901760, %v3067_v59 }
  0x8b   :  { %895 = vmatmul.f32.gmra.mxu2 %v2510_v60  ;;  %944 = vmatmul.f32.gmra.mxu3 %v2510_v60  ;;  %3827 = vst [vmem:[#allocation11_spill] sm:$0xff] %v3054_v31  ;;  %v3081_v26 = vsub.f32 %v26_v54, %v3054_v31  ;;  %v3114_v54 = vsub.f32 %v79_v63, %v3083_v12 }
  0x8c   :  { %1058 = vmatpush.msrb.mxu1 %v1057_v56  ;;  %1156 = vmatpush.msrb.mxu2 %v2985_v49  ;;  %v1080_v56 = vsub.f32 %v3017_v11, %v3726_v52  ;;  %v1086_v52 = vsub.f32 %v3029_v8, %v3730_v24  ;;  %3829 = vst [vmem:[#allocation18_spill] sm:$0xff] %v3096_v38 }
  0x8d   :  { %973 = vmatpush.msrb.mxu0 %v2991_v32  ;;  %1216 = vmatpush.msrb.mxu3 %v2959_v17  ;;  %v1098_v63 = vsub.f32 %v3067_v59, %v3830_v39  ;;  %v3831_v39 = vand.u32 4294901760, %v3081_v26 }
  0x8e   :  { %1064 = vmatpush.msrb.mxu1 %v1063_v34  ;;  %1159 = vmatpush.msrb.mxu2 %v2997_v6  ;;  %v75_v34 = vld [vmem:[%s3676_s0 + $0x1b8] sm:$0xff]  ;;  %v1081_v18 = vand.u32 4294901760, %v1080_v56  ;;  %v1087_v4 = vand.u32 4294901760, %v1086_v52  ;;  %v3118_v56 = vand.u32 4294901760, %v71_v25 }
  0x8f   :  { %975 = vmatpush.msrb.mxu0 %v3003_v43  ;;  %1218 = vmatpush.msrb.mxu3 %v2971_v1  ;;  %v1099_v52 = vand.u32 4294901760, %v1098_v63 }
  0x90   :  { %761 = vmatmul.f32.gmra.mxu0 %v2622_v7  ;;  %812 = vmatmul.f32.gmra.mxu1 %v2573_v13 }
  0x91   :  { %1070 = vmatpush.msrb.mxu1 %v1069_v5  ;;  %1162 = vmatpush.msrb.mxu2 %v3017_v11  ;;  %v3106_v5 = vand.u32 4294901760, %v75_v34 }
  0x92   :  { %977 = vmatpush.msrb.mxu0 %v3023_v44  ;;  %1220 = vmatpush.msrb.mxu3 %v2991_v32  ;;  %v63_v32 = vld [vmem:[%s3676_s0 + $0x158] sm:$0xff] }
  0x93   :  { %1076 = vmatpush.msrb.mxu1 %v1075_v30  ;;  %1165 = vmatpush.msrb.mxu2 %v3029_v8  ;;  %v67_v30 = vld [vmem:[%s3676_s0 + $0x178] sm:$0xff] }
  0x94   :  { %979 = vmatpush.msrb.mxu0 %v3038_v42  ;;  %1222 = vmatpush.msrb.mxu3 %v3003_v43  ;;  %v3132_v43 = vsub.f32 %v75_v34, %v3106_v5  ;;  %v3143_v7 = vand.u32 4294901760, %v67_v30  ;;  %v3147_v34 = vsub.f32 %v71_v25, %v3118_v56  ;;  %v3834_v25 = vand.u32 4294901760, %v3104_v53 }
  0x95   :  { %899 = vmatmul.f32.gmra.mxu2 %v2591_v19  ;;  %948 = vmatmul.f32.gmra.mxu3 %v2591_v19  ;;  %v1093_v19 = vand.u32 4294901760, %v1092_v47  ;;  %v3833_v47 = vand.u32 4294901760, %v3096_v38 }
  0x96   :  { %1082 = vmatpush.msrb.mxu1 %v1081_v18  ;;  %1168 = vmatpush.msrb.mxu2 %v3052_v36  ;;  %v1104_v18 = vsub.f32 %v3081_v26, %v3831_v39  ;;  %3832 = vst [vmem:[#allocation19_spill] sm:$0xff] %v3147_v34  ;;  %v3154_v39 = vand.u32 4294901760, %v63_v32  ;;  %v1110_v24 = vsub.f32 %v3104_v53, %v3834_v25  ;;  %v3836_v25 = vand.u32 4294901760, %v2854_v14 }
  0x97   :  { %981 = vmatpush.msrb.mxu0 %v3054_v31  ;;  %1224 = vmatpush.msrb.mxu3 %v3023_v44  ;;  %v1454_v44 = vsub.f32 %v3096_v38, %v3833_v47  ;;  %v3838_v14 = vand.u32 4294901760, %v3132_v43 }
  0x98   :  { %1088 = vmatpush.msrb.mxu1 %v1087_v4  ;;  %1171 = vmatpush.msrb.mxu2 %v3067_v59  ;;  %v59_v4 = vld [vmem:[%s3676_s0 + $0x138] sm:$0xff]  ;;  %v1105_v47 = vand.u32 4294901760, %v1104_v18  ;;  %v3170_v59 = vsub.f32 %v67_v30, %v3143_v7  ;;  %v3183_v30 = vsub.f32 %v63_v32, %v3154_v39  ;;  %v3837_v18 = vand.u32 4294901760, %v2867_v45 }
  0x99   :  { %983 = vmatpush.msrb.mxu0 %v3075_v58  ;;  %1226 = vmatpush.msrb.mxu3 %v3038_v42  ;;  %v3835_v42 = vand.u32 4294901760, %v3114_v54  ;;  %v3179_v63 = vand.u32 4294901760, %v59_v4  ;;  %v3839_v45 = vand.u32 4294901760, %v3147_v34 }
  0x9a   :  { %818 = vmatmul.f32.gmra.mxu1 %v2653_v27  ;;  %989 = vmatmul.f32.vlgmr.msrb.gmra.mxu0 %v3805_v46  ;;  %v55_v46 = vld [vmem:[%s3676_s0 + $0x118] sm:$0xff] }
  0x9b   :  { %1094 = vmatpush.msrb.mxu1 %v1093_v19  ;;  %1174 = vmatpush.msrb.mxu2 %v3081_v26  ;;  %v1460_v38 = vsub.f32 %v3114_v54, %v3835_v42  ;;  %v1455_v42 = vand.u32 4294901760, %v1454_v44  ;;  %v3191_v19 = vand.u32 4294901760, %v55_v46  ;;  %v3749_v44 = vand.u32 4294901760, %v3183_v30 }
  0x9c   :  { %1228 = vmatpush.msrb.mxu3 %v3054_v31  ;;  %1259 = vmatpush.msra.mxu0 %v3836_v25  ;;  %v1111_v31 = vand.u32 4294901760, %v1110_v24  ;;  %v1466_v25 = vsub.f32 %v3132_v43, %v3838_v14  ;;  %v1472_v24 = vsub.f32 %v3147_v34, %v3839_v45  ;;  %v3842_v34 = vand.u32 4294901760, %v3170_v59 }
  0x9d   :  { %1100 = vmatpush.msrb.mxu1 %v1099_v52  ;;  %1177 = vmatpush.msrb.mxu2 %v3104_v53  ;;  %v51_v52 = vld [vmem:[%s3676_s0 + $0xf8] sm:$0xff]  ;;  %v1461_v32 = vand.u32 4294901760, %v1460_v38  ;;  %v3840_v38 = vand.u32 4294901760, %v2883_v37 }
  0x9e   :  { %1230 = vmatpush.msrb.mxu3 %v3075_v58  ;;  %1263 = vmatpush.msra.mxu0 %v3837_v18  ;;  %v3204_v18 = vsub.f32 %v59_v4, %v3179_v63  ;;  %v1467_v45 = vand.u32 4294901760, %v1466_v25  ;;  %v3218_v4 = vsub.f32 %v55_v46, %v3191_v19  ;;  %v1478_v37 = vsub.f32 %v3170_v59, %v3842_v34  ;;  %v39_v34 = vld [vmem:[%s3676_s0 + $0x98] sm:$0xff] }
  0x9f   :  { %1106 = vmatpush.msrb.mxu1 %v1105_v47  ;;  %1180 = vmatmul.f32.vlgmr.msrb.gmra.mxu2 %v3819_v22  ;;  %v47_v47 = vld [vmem:[%s3676_s0 + $0xd8] sm:$0xff]  ;;  %v3841_v22 = vand.u32 4294901760, %v2897_v23  ;;  %v1473_v46 = vand.u32 4294901760, %v1472_v24 }
  0xa0   :  { %1234 = vmatmul.f32.vlgmr.msrb.gmra.mxu3 %v3821_v41  ;;  %1387 = vmatpush.msra.mxu2 %v3069_v0  ;;  %v3209_v14 = vpop.f32.mrf.mxu0  ;;  %v3214_v41 = vand.u32 4294901760, %v51_v52  ;;  %v3750_v25 = vand.u32 4294901760, %v3204_v18  ;;  %v3752_v24 = vand.u32 4294901760, %v3218_v4 }
  0xa1   :  { %1267 = vmatpush.msra.mxu0 %v3840_v38  ;;  %1456 = vmatpush.msra.mxu3 %v1455_v42  ;;  %v3225_v42 = vand.u32 4294901760, %v47_v47  ;;  %v1479_v38 = vand.u32 4294901760, %v1478_v37  ;;  %v3845_v37 = vand.u32 4294901760, %v2953_v51 }
  0xa2   :  { %1112 = vmatpush.msrb.mxu1 %v1111_v31  ;;  %1389 = vmatpush.msra.mxu2 %v3083_v12  ;;  %v43_v31 = vld [vmem:[%s3676_s0 + $0xb8] sm:$0xff]  ;;  %v3239_v23 = vsub.f32 %v51_v52, %v3214_v41 }
  0xa3   :  { %1271 = vmatpush.msra.mxu0 %v3841_v22  ;;  %1462 = vmatpush.msra.mxu3 %v1461_v32  ;;  %v1484_v22 = vsub.f32 %v3183_v30, %v3749_v44  ;;  %v3843_v32 = vand.u32 4294901760, %v2919_v10  ;;  %v3252_v52 = vsub.f32 %v47_v47, %v3225_v42  ;;  %v3844_v44 = vand.u32 4294901760, %v2932_v28 }
  0xa4   :  { %997 = vmatmul.f32.gmra.mxu0 %v3811_v21  ;;  %1114 = vmatmul.f32.vlgmr.msrb.gmra.mxu1 %v2360_v2  ;;  %v1490_v10 = vsub.f32 %v3204_v18, %v3750_v25  ;;  %v3847_v51 = vand.u32 4294901760, %v3239_v23 }
  0xa5   :  { %1338 = vmatpush.msra.mxu1 %v2837_v62  ;;  %1391 = vmatpush.msra.mxu2 %v3106_v5  ;;  %v3247_v62 = vand.u32 4294901760, %v43_v31  ;;  %v1485_v47 = vand.u32 4294901760, %v1484_v22  ;;  %v31_v22 = vld [vmem:[%s3676_s0 + $0x58] sm:$0xff] }
  0xa6   :  { %1275 = vmatpush.msra.mxu0 %v3843_v32  ;;  %1468 = vmatpush.msra.mxu3 %v1467_v45  ;;  %v3259_v45 = vand.u32 4294901760, %v39_v34 }
  0xa7   :  { %1340 = vmatpush.msra.mxu1 %v2844_v61  ;;  %1393 = vmatpush.msra.mxu2 %v3118_v56  ;;  %v35_v61 = vld [vmem:[%s3676_s0 + $0x78] sm:$0xff]  ;;  %v3277_v32 = vsub.f32 %v43_v31, %v3247_v62  ;;  %v1491_v31 = vand.u32 4294901760, %v1490_v10 }
  0xa8   :  { %1279 = vmatpush.msra.mxu0 %v3844_v44  ;;  %1474 = vmatpush.msra.mxu3 %v1473_v46  ;;  %v1496_v46 = vsub.f32 %v3218_v4, %v3752_v24  ;;  %v3292_v24 = vsub.f32 %v39_v34, %v3259_v45 }
  0xa9   :  { %1185 = vmatmul.f32.gmra.mxu2 %v3820_v29  ;;  %1240 = vmatmul.f32.gmra.mxu3 %v3824_v16  ;;  %v3267_v28 = vpop.f32.mrf.mxu0  ;;  %v3269_v44 = vpop.f32.mrf.mxu1  ;;  %v3287_v16 = vand.u32 4294901760, %v35_v61  ;;  %v3846_v29 = vand.u32 4294901760, %v2965_v9  ;;  %v3848_v9 = vand.u32 4294901760, %v3252_v52 }
  0xaa   :  { %1342 = vmatpush.msra.mxu1 %v2862_v55  ;;  %1395 = vmatpush.msra.mxu2 %v3143_v7  ;;  %v3282_v25 = vpop.f32.mrf.mxu2  ;;  %v3304_v55 = vpop.f32.mrf.mxu3  ;;  %v1497_v34 = vand.u32 4294901760, %v1496_v46 }
  0xab   :  { %1283 = vmatpush.msra.mxu0 %v3845_v37  ;;  %1480 = vmatpush.msra.mxu3 %v1479_v38  ;;  %v1502_v38 = vsub.f32 %v3239_v23, %v3847_v51  ;;  %v3299_v37 = vand.u32 4294901760, %v31_v22  ;;  %v1508_v10 = vsub.f32 %v3252_v52, %v3848_v9  ;;  %v23_v51 = vld [vmem:[%s3676_s0 + $0x18] sm:$0xff] }
  0xac   :  { %1344 = vmatpush.msra.mxu1 %v2872_v15  ;;  %1397 = vmatpush.msra.mxu2 %v3154_v39  ;;  %v27_v15 = vld [vmem:[%s3676_s0 + $0x38] sm:$0xff] }
  0xad   :  { %1287 = vmatpush.msra.mxu0 %v3846_v29  ;;  %1486 = vmatpush.msra.mxu3 %v1485_v47  ;;  %v3315_v47 = vsub.f32 %v35_v61, %v3287_v16  ;;  %v1503_v9 = vand.u32 4294901760, %v1502_v38  ;;  %v3328_v61 = vsub.f32 %v31_v22, %v3299_v37  ;;  %v3850_v29 = vand.u32 4294901760, %v2997_v6 }
  0xae   :  { %1005 = vmatmul.f32.gmra.mxu0 %v2634_v50  ;;  %1118 = vmatmul.f32.gmra.mxu1 %v2421_v57  ;;  %v3849_v50 = vand.u32 4294901760, %v2985_v49  ;;  %v3851_v49 = vand.u32 4294901760, %v3277_v32  ;;  %v3852_v6 = vand.u32 4294901760, %v3292_v24 }
  0xaf   :  { %1346 = vmatpush.msra.mxu1 %v2891_v40  ;;  %1399 = vmatpush.msra.mxu2 %v3179_v63  ;;  %v3323_v40 = vand.u32 4294901760, %v27_v15  ;;  %v3757_v38 = vand.u32 4294901760, %v3328_v61 }
  0xb0   :  { %1291 = vmatpush.msra.mxu0 %v3849_v50  ;;  %1492 = vmatpush.msra.mxu3 %v1491_v31  ;;  %v1514_v50 = vsub.f32 %v3277_v32, %v3851_v49  ;;  %v3335_v31 = vand.u32 4294901760, %v23_v51 }
  0xb1   :  { %1348 = vmatpush.msra.mxu1 %v2905_v20  ;;  %1401 = vmatpush.msra.mxu2 %v3191_v19  ;;  %v1509_v20 = vand.u32 4294901760, %v1508_v10  ;;  %v3853_v10 = vand.u32 4294901760, %v3017_v11 }
  0xb2   :  { %1295 = vmatpush.msra.mxu0 %v3850_v29  ;;  %1498 = vmatpush.msra.mxu3 %v1497_v34  ;;  %v1520_v34 = vsub.f32 %v3292_v24, %v3852_v6  ;;  %v3350_v29 = vsub.f32 %v27_v15, %v3323_v40  ;;  %v3854_v6 = vand.u32 4294901760, %v3029_v8  ;;  %v3855_v15 = vand.u32 4294901760, %v3315_v47 }
  0xb3   :  { %1190 = vmatmul.f32.gmra.mxu2 %v2541_v33  ;;  %1246 = vmatmul.f32.gmra.mxu3 %v2573_v13  ;;  %v3340_v46 = vpop.f32.mrf.mxu0  ;;  %v3342_v22 = vpop.f32.mrf.mxu1  ;;  %v3360_v13 = vsub.f32 %v23_v51, %v3335_v31  ;;  %v1532_v8 = vsub.f32 %v3328_v61, %v3757_v38  ;;  %v3856_v51 = vand.u32 4294901760, %v3052_v36  ;;  %v3864_v38 = vld [vmem:[#allocation14_spill] sm:$0xff] }
  0xb4   :  { %1350 = vmatpush.msra.mxu1 %v2926_v3  ;;  %1403 = vmatpush.msra.mxu2 %v3214_v41  ;;  %v3352_v49 = vpop.f32.mrf.mxu2  ;;  %v1515_v3 = vand.u32 4294901760, %v1514_v50  ;;  %v1526_v11 = vsub.f32 %v3315_v47, %v3855_v15  ;;  %v3859_v15 = vld [vmem:[#allocation15_spill] sm:$0xff] }
  0xb5   :  { %1299 = vmatpush.msra.mxu0 %v3853_v10  ;;  %1504 = vmatpush.msra.mxu3 %v1503_v9  ;;  %v3367_v10 = vpop.f32.mrf.mxu3  ;;  %v3756_v9 = vand.u32 4294901760, %v3350_v29  ;;  %v3758_v50 = vand.u32 4294901760, %v3360_v13  ;;  %v1533_v36 = vand.u32 4294901760, %v1532_v8 }
  0xb6   :  { %1352 = vmatpush.msra.mxu1 %v2939_v35  ;;  %1405 = vmatpush.msra.mxu2 %v3225_v42  ;;  %v1521_v35 = vand.u32 4294901760, %v1520_v34  ;;  %v3857_v34 = vld [vmem:[#allocation12_spill] sm:$0xff] }
  0xb7   :  { %1303 = vmatpush.msra.mxu0 %v3854_v6  ;;  %1510 = vmatpush.msra.mxu3 %v1509_v20  ;;  %v1527_v20 = vand.u32 4294901760, %v1526_v11  ;;  %v3858_v6 = vand.u32 4294901760, %v3857_v34  ;;  %v1544_v11 = vsub.f32 %v3360_v13, %v3758_v50  ;;  %v3861_v34 = vand.u32 4294901760, %v3081_v26  ;;  %v3866_v26 = vld [vmem:[#allocation18_spill] sm:$0xff] }
  0xb8   :  { %1013 = vmatmul.f32.gmra.mxu0 %v2706_v48  ;;  %1122 = vmatmul.f32.gmra.mxu1 %v2510_v60 }
  0xb9   :  { %1354 = vmatpush.msra.mxu1 %v2959_v17  ;;  %1407 = vmatpush.msra.mxu2 %v3247_v62  ;;  %v1538_v17 = vsub.f32 %v3350_v29, %v3756_v9  ;;  %v3863_v9 = vand.u32 4294901760, %v3104_v53  ;;  %v1545_v50 = vand.u32 4294901760, %v1544_v11  ;;  %v248_v53 = vadd.f32 %v3269_v44, %v3209_v14 }
  0xba   :  { %1307 = vmatpush.msra.mxu0 %v3856_v51  ;;  %1516 = vmatpush.msra.mxu3 %v1515_v3  ;;  %v3870_v11 = vand.u32 4294901760, %v3866_v26  ;;  %v3871_v14 = vand.u32 4294901760, %v3114_v54 }
  0xbb   :  { %1356 = vmatpush.msra.mxu1 %v2971_v1  ;;  %1409 = vmatpush.msra.mxu2 %v3259_v45  ;;  %v3860_v1 = vld [vmem:[#allocation6_spill] sm:$0xff]  ;;  %v1539_v8 = vand.u32 4294901760, %v1538_v17  ;;  %v3869_v17 = vld [vmem:[#allocation9_spill] sm:$0xff]  ;;  %v314_v44 = vadd.f32 %v3282_v25, %v248_v53 }
  0xbc   :  { %1311 = vmatpush.msra.mxu0 %v3858_v6  ;;  %1522 = vmatpush.msra.mxu3 %v1521_v35  ;;  %v3862_v6 = vld [vmem:[#allocation2_spill] sm:$0xff] }
  0xbd   :  { %1195 = vmatmul.f32.gmra.mxu2 %v3859_v15  ;;  %1252 = vmatmul.f32.gmra.mxu3 %v2653_v27  ;;  %v3389_v3 = vpop.f32.mrf.mxu0  ;;  %v3391_v51 = vpop.f32.mrf.mxu1  ;;  %v3865_v27 = vld [vmem:[#allocation7_spill] sm:$0xff] }
  0xbe   :  { %1358 = vmatpush.msra.mxu1 %v3860_v1  ;;  %1411 = vmatpush.msra.mxu2 %v3287_v16  ;;  %v3398_v35 = vpop.f32.mrf.mxu2  ;;  %v3406_v1 = vpop.f32.mrf.mxu3 }
  0xbf   :  { %1315 = vmatpush.msra.mxu0 %v3861_v34  ;;  %1528 = vmatpush.msra.mxu3 %v1527_v20  ;;  %v3867_v20 = vld [vmem:[#allocation3_spill] sm:$0xff] }
  0xc0   :  { %1360 = vmatpush.msra.mxu1 %v3862_v6  ;;  %1413 = vmatpush.msra.mxu2 %v3299_v37 }
  0xc1   :  { %1319 = vmatpush.msra.mxu0 %v3863_v9  ;;  %1534 = vmatpush.msra.mxu3 %v1533_v36  ;;  %v3868_v9 = vld [vmem:[#allocation11_spill] sm:$0xff] }
  0xc2   :  { %1126 = vmatmul.f32.gmra.mxu1 %v3864_v38  ;;  %1321 = vmatmul.f32.vlgmr.msra.gmra.mxu0 %v2360_v2 }
  0xc3   :  { %1362 = vmatpush.msra.mxu1 %v3865_v27  ;;  %1415 = vmatpush.msra.mxu2 %v3323_v40 }
  0xc4   :  { %1540 = vmatpush.msra.mxu3 %v1539_v8  ;;  %1566 = vmatpush.msrb.mxu0 %v3866_v26  ;;  %v3873_v8 = vand.u32 4294901760, %v3132_v43 }
  0xc5   :  { %1364 = vmatpush.msra.mxu1 %v3867_v20  ;;  %1417 = vmatpush.msra.mxu2 %v3335_v31 }
  0xc6   :  { %1546 = vmatpush.msra.mxu3 %v1545_v50  ;;  %1569 = vmatpush.msrb.mxu0 %v3114_v54  ;;  %v3872_v50 = vld [vmem:[#allocation19_spill] sm:$0xff] }
  0xc7   :  { %1366 = vmatpush.msra.mxu1 %v3868_v9  ;;  %1423 = vmatmul.f32.vlgmr.msra.gmra.mxu2 %v3869_v17  ;;  %v3420_v27 = vpop.f32.mrf.mxu1  ;;  %v454_v36 = vpop.f32.mrf.mxu0  ;;  %v3874_v54 = vand.u32 4294901760, %v3872_v50 }
  0xc8   :  { %1548 = vmatmul.f32.vlgmr.msra.gmra.mxu3 %v2360_v2  ;;  %1693 = vmatpush.msrb.mxu2 %v3870_v11  ;;  %v3425_v34 = vpop.f32.mrf.mxu2  ;;  %v3435_v6 = vpop.f32.mrf.mxu3 }
  0xc9   :  { %1572 = vmatpush.msrb.mxu0 %v3132_v43  ;;  %1368 = vmatpush.msra.mxu1 %v3075_v58  ;;  %v368_v58 = vadd.f32 %v3304_v55, %v314_v44 }
  0xca   :  { %1697 = vmatpush.msrb.mxu2 %v3871_v14  ;;  %1772 = vmatpush.msrb.mxu3 %v3069_v0  ;;  %v3884_v14 = vand.u32 4294901760, %v3315_v47 }
  0xcb   :  { %1575 = vmatpush.msrb.mxu0 %v3872_v50  ;;  %1370 = vmatmul.f32.vlgmr.msra.gmra.mxu1 %v2360_v2  ;;  %v455_v43 = vadd.f32 %v454_v36, %v368_v58  ;;  %v3886_v58 = vld [vmem:[#allocation4_spill] sm:$0xff] }
  0xcc   :  { %1325 = vmatmul.f32.gmra.mxu0 %v2421_v57  ;;  %1634 = vmatpush.msrb.mxu1 %v3069_v0  ;;  %v252_v0 = vadd.f32 %v3342_v22, %v3267_v28  ;;  %v3878_v22 = vand.u32 4294901760, %v3218_v4 }
  0xcd   :  { %1701 = vmatpush.msrb.mxu2 %v3873_v8  ;;  %1774 = vmatpush.msrb.mxu3 %v3083_v12 }
  0xce   :  { %1578 = vmatpush.msrb.mxu0 %v3170_v59  ;;  %1636 = vmatpush.msrb.mxu1 %v3083_v12  ;;  %v3875_v12 = vand.u32 4294901760, %v3170_v59 }
  0xcf   :  { %1705 = vmatpush.msrb.mxu2 %v3874_v54  ;;  %1776 = vmatpush.msrb.mxu3 %v3106_v5  ;;  %v3888_v54 = vand.u32 4294901760, %v3360_v13 }
  0xd0   :  { %1581 = vmatpush.msrb.mxu0 %v3183_v30  ;;  %1431 = vmatmul.f32.gmra.mxu2 %v3811_v21  ;;  %v3876_v21 = vand.u32 4294901760, %v3183_v30 }
  0xd1   :  { %1552 = vmatmul.f32.gmra.mxu3 %v2421_v57  ;;  %1638 = vmatpush.msrb.mxu1 %v3106_v5  ;;  %v458_v25 = vpop.f32.mrf.mxu0  ;;  %v503_v55 = vpop.f32.mrf.mxu1  ;;  %v319_v5 = vadd.f32 %v3352_v49, %v252_v0 }
  0xd2   :  { %1709 = vmatpush.msrb.mxu2 %v3875_v12  ;;  %1778 = vmatpush.msrb.mxu3 %v3118_v56  ;;  %v504_v26 = vadd.f32 %v503_v55, %v455_v43  ;;  %v3457_v20 = vpop.f32.mrf.mxu2 }
  0xd3   :  { %1584 = vmatpush.msrb.mxu0 %v3204_v18  ;;  %1640 = vmatpush.msrb.mxu1 %v3118_v56  ;;  %v3467_v59 = vpop.f32.mrf.mxu3  ;;  %v3877_v56 = vand.u32 4294901760, %v3204_v18  ;;  %v374_v30 = vadd.f32 %v3367_v10, %v319_v5  ;;  %v256_v18 = vadd.f32 %v3391_v51, %v3340_v46  ;;  %v3881_v51 = vand.u32 4294901760, %v3252_v52 }
  0xd4   :  { %1713 = vmatpush.msrb.mxu2 %v3876_v21  ;;  %1780 = vmatpush.msrb.mxu3 %v3143_v7  ;;  %v2092_v28 = vmul.f32 -1.442695, %v504_v26  ;;  %v3890_v26 = vld [vmem:[#allocation8_spill] sm:$0xff] }
  0xd5   :  { %1587 = vmatpush.msrb.mxu0 %v3218_v4  ;;  %1374 = vmatmul.f32.gmra.mxu1 %v2421_v57  ;;  %v459_v49 = vadd.f32 %v458_v25, %v374_v30  ;;  %v3880_v4 = vand.u32 4294901760, %v3239_v23 }
  0xd6   :  { %1329 = vmatmul.f32.gmra.mxu0 %v2510_v60  ;;  %1642 = vmatpush.msrb.mxu1 %v3143_v7  ;;  %2104 = vpow2.f32 %v2092_v28  ;;  %v3879_v7 = vld [vmem:[#allocation16_spill] sm:$0xff] }
  0xd7   :  { %1717 = vmatpush.msrb.mxu2 %v3877_v56  ;;  %1782 = vmatpush.msrb.mxu3 %v3154_v39 }
  0xd8   :  { %1590 = vmatpush.msrb.mxu0 %v3239_v23  ;;  %1644 = vmatpush.msrb.mxu1 %v3154_v39 }
  0xd9   :  { %1721 = vmatpush.msrb.mxu2 %v3878_v22  ;;  %1784 = vmatpush.msrb.mxu3 %v3179_v63 }
  0xda   :  { %1593 = vmatpush.msrb.mxu0 %v3252_v52  ;;  %1439 = vmatmul.f32.gmra.mxu2 %v3879_v7 }
  0xdb   :  { %1556 = vmatmul.f32.gmra.mxu3 %v2510_v60  ;;  %1646 = vmatpush.msrb.mxu1 %v3179_v63  ;;  %v462_v10 = vpop.f32.mrf.mxu0  ;;  %v507_v53 = vpop.f32.mrf.mxu1  ;;  %v324_v63 = vadd.f32 %v3398_v35, %v256_v18  ;;  %v3883_v35 = vand.u32 4294901760, %v3292_v24 }
  0xdc   :  { %v2105_v39 = vpop.eup %2104  ;;  %1725 = vmatpush.msrb.mxu2 %v3880_v4  ;;  %1786 = vmatpush.msrb.mxu3 %v3191_v19  ;;  %v508_v9 = vadd.f32 %v507_v53, %v459_v49  ;;  %v3489_v17 = vpop.f32.mrf.mxu2  ;;  %v2052_v4 = vld [vmem:[%s3678_s2] sm:$0xff] }
  0xdd   :  { %1596 = vmatpush.msrb.mxu0 %v3277_v32  ;;  %1648 = vmatpush.msrb.mxu1 %v3191_v19  ;;  %v3493_v46 = vadd.f32 1.0, %v2105_v39  ;;  %v3502_v36 = vpop.f32.mrf.mxu3  ;;  %v3882_v19 = vand.u32 4294901760, %v3277_v32  ;;  %v380_v52 = vadd.f32 %v3406_v1, %v324_v63  ;;  %v3893_v63 = vld [vmem:[#allocation10_spill] sm:$0xff] }
  0xde   :  { %1729 = vmatpush.msrb.mxu2 %v3881_v51  ;;  %1788 = vmatpush.msrb.mxu3 %v3214_v41  ;;  %v2096_v23 = vmul.f32 -1.442695, %v508_v9 }
  0xdf   :  { %1599 = vmatpush.msrb.mxu0 %v3292_v24  ;;  %1378 = vmatmul.f32.gmra.mxu1 %v2510_v60  ;;  %2106 = vrcp.f32 %v3493_v46  ;;  %v463_v32 = vadd.f32 %v462_v10, %v380_v52  ;;  %vm1841_vm1 = vweird.f32 %v3493_v46  ;;  %v1845_v30 = vand.u32 2147483647, %v3493_v46 }
  0xe0   :  { %1333 = vmatmul.f32.gmra.mxu0 %v3864_v38  ;;  %1650 = vmatpush.msrb.mxu1 %v3214_v41  ;;  %2108 = vpow2.f32 %v2096_v23  ;;  %v260_v41 = vadd.f32 %v3420_v27, %v3389_v3  ;;  %v682_v10 = vadd.f32 %v3467_v59, %v3457_v20 }
  0xe1   :  { %1733 = vmatpush.msrb.mxu2 %v3882_v19  ;;  %1790 = vmatpush.msrb.mxu3 %v3225_v42  ;;  %vm1846_vm6 = vcmp.eq.f32.partialorder %v1845_v30, 8.507059e+37 }
  0xe2   :  { %1602 = vmatpush.msrb.mxu0 %v3315_v47  ;;  %1652 = vmatpush.msrb.mxu1 %v3225_v42  ;;  %v329_v47 = vadd.f32 %v3425_v34, %v260_v41 }
  0xe3   :  { %1737 = vmatpush.msrb.mxu2 %v3883_v35  ;;  %1792 = vmatpush.msrb.mxu3 %v3247_v62 }
  0xe4   :  { %1605 = vmatpush.msrb.mxu0 %v3328_v61  ;;  %1447 = vmatmul.f32.gmra.mxu2 %v2706_v48  ;;  %v386_v34 = vadd.f32 %v3435_v6, %v329_v47 }
  0xe5   :  { %v3519_v11 = vpop.eup %2106  ;;  %1560 = vmatmul.f32.gmra.mxu3 %v3864_v38  ;;  %1654 = vmatpush.msrb.mxu1 %v3247_v62  ;;  %v466_v42 = vpop.f32.mrf.mxu0  ;;  %v3885_v62 = vand.u32 4294901760, %v3328_v61  ;;  %v3887_v61 = vand.u32 4294901760, %v3350_v29 }
  0xe6   :  { %v511_v1 = vpop.f32.mrf.mxu1  ;;  %v2109_v24 = vpop.eup %2108  ;;  %1741 = vmatpush.msrb.mxu2 %v3884_v14  ;;  %1794 = vmatpush.msrb.mxu3 %v3259_v45  ;;  %v1837_v48 = vmul.f32 %v3519_v11, %v3493_v46  ;;  %vm1842_vm0 = vweird.f32 %v3519_v11 }
  0xe7   :  { %v512_v44 = vadd.f32 %v511_v1, %v463_v32  ;;  %v3528_v3 = vpop.f32.mrf.mxu2  ;;  %1608 = vmatpush.msrb.mxu0 %v3350_v29  ;;  %1656 = vmatpush.msrb.mxu1 %v3259_v45  ;;  %v3532_v27 = vadd.f32 1.0, %v2109_v24  ;;  %v3541_v8 = vpop.f32.mrf.mxu3  ;;  %vm3576_vm3 = vmor %vm1841_vm1, %vm1842_vm0 }
  0xe8   :  { %1745 = vmatpush.msrb.mxu2 %v3885_v62  ;;  %1796 = vmatpush.msrb.mxu3 %v3287_v16  ;;  %v1838_v45 = vsub.f32 1.0, %v1837_v48  ;;  %v686_v62 = vadd.f32 %v3502_v36, %v3489_v17 }
  0xe9   :  { %v2100_v50 = vmul.f32 -1.442695, %v512_v44  ;;  %1611 = vmatpush.msrb.mxu0 %v3360_v13  ;;  %1382 = vmatmul.f32.gmra.mxu1 %v3864_v38  ;;  %2110 = vrcp.f32 %v3532_v27  ;;  %v1921_v22 = vand.u32 2147483647, %v3532_v27  ;;  %vm1917_vm4 = vweird.f32 %v3532_v27 }
  0xea   :  { %1614 = vmatmul.f32.vlgmr.msrb.gmra.mxu0 %v3886_v58  ;;  %1658 = vmatpush.msrb.mxu1 %v3287_v16  ;;  %v467_v16 = vadd.f32 %v466_v42, %v386_v34  ;;  %v1839_v0 = vmul.f32 %v3519_v11, %v1838_v45 }
  0xeb   :  { %2112 = vpow2.f32 %v2100_v50  ;;  %1749 = vmatpush.msrb.mxu2 %v3887_v61  ;;  %1798 = vmatpush.msrb.mxu3 %v3299_v37  ;;  %vm1922_vm7 = vcmp.eq.f32.partialorder %v1921_v22, 8.507059e+37  ;;  %v3894_v50 = vld [vmem:[#allocation13_spill] sm:$0xff] }
  0xec   :  { %1660 = vmatpush.msrb.mxu1 %v3299_v37  ;;  %v1840_v5 = vadd.f32 %v3519_v11, %v1839_v0 }
  0xed   :  { %1753 = vmatpush.msrb.mxu2 %v3888_v54  ;;  %1800 = vmatpush.msrb.mxu3 %v3323_v40 }
  0xee   :  { %1662 = vmatpush.msrb.mxu1 %v3323_v40  ;;  %1755 = vmatmul.f32.vlgmr.msrb.gmra.mxu2 %v2360_v2  ;;  %v3889_v40 = vld [vmem:[#allocation5_spill] sm:$0xff]  ;;  %v1844_v18 = vsel %vm3576_vm3, %v3519_v11, %v1840_v5 }
  0xef   :  { %v2111_v29 = vpop.eup %2110  ;;  %1802 = vmatpush.msrb.mxu3 %v3335_v31  ;;  %v515_v43 = vpop.f32.mrf.mxu1 }
  0xf0   :  { %v747_v25 = vpop.f32.mrf.mxu0  ;;  %1664 = vmatpush.msrb.mxu1 %v3335_v31  ;;  %1804 = vmatmul.f32.vlgmr.msrb.gmra.mxu3 %v2360_v2  ;;  %v1913_v13 = vmul.f32 %v2111_v29, %v3532_v27  ;;  %v516_v37 = vadd.f32 %v515_v43, %v467_v16  ;;  %v3560_v55 = vpop.f32.mrf.mxu2  ;;  %v1923_v31 = vand.u32 2147483648, %v3532_v27  ;;  %v1847_v2 = vand.u32 2147483648, %v3493_v46 }
  0xf1   :  { %v2113_v6 = vpop.eup %2112  ;;  %1668 = vmatmul.f32.vlgmr.msrb.gmra.mxu1 %v3889_v40  ;;  %v3572_v28 = vpop.f32.mrf.mxu3  ;;  %vm1918_vm2 = vweird.f32 %v2111_v29  ;;  %v748_v52 = vadd.f32 %v747_v25, %v682_v10 }
  0xf2   :  { %v3563_v12 = vadd.f32 1.0, %v2113_v6  ;;  %1619 = vmatmul.f32.gmra.mxu0 %v3890_v26  ;;  %v1914_v21 = vsub.f32 1.0, %v1913_v13  ;;  %2114 = vtanh.f32 %v516_v37  ;;  %vm1919_vm5 = vmor %vm1917_vm4, %vm1918_vm2  ;;  %v1924_v53 = vor.u32 1.1754944e-38, %v1923_v31  ;;  %v3895_v13 = vld [vmem:[#allocation17_spill] sm:$0xff] }
  0xf3   :  { %v1848_v39 = vor.u32 1.1754944e-38, %v1847_v2  ;;  %v690_v37 = vadd.f32 %v3541_v8, %v3528_v3 }
  0xf4   :  { %2116 = vrcp.f32 %v3563_v12  ;;  %v1915_v56 = vmul.f32 %v2111_v29, %v1914_v21  ;;  %v1999_v44 = vand.u32 2147483648, %v3563_v12  ;;  %vm1993_vm9 = vweird.f32 %v3563_v12 }
  0xf5   :  { %v1849_v23 = vsel %vm1846_vm6, %v1848_v39, %v1844_v18 }
  0xf6   :  { %1759 = vmatmul.f32.gmra.mxu2 %v2421_v57  ;;  %v1916_v49 = vadd.f32 %v2111_v29, %v1915_v56  ;;  %v2000_v61 = vor.u32 1.1754944e-38, %v1999_v44 }
  0xf8   :  { %v2115_v9 = vpop.eup %2114  ;;  %1808 = vmatmul.f32.gmra.mxu3 %v2421_v57  ;;  %v1920_v46 = vsel %vm1919_vm5, %v2111_v29, %v1916_v49  ;;  %v694_v49 = vadd.f32 %v3572_v28, %v3560_v55 }
  0xf9   :  { %1674 = vmatmul.f32.gmra.mxu1 %v3893_v63  ;;  %v1925_v19 = vsel %vm1922_vm7, %v1924_v53, %v1920_v46  ;;  %v752_v20 = vpop.f32.mrf.mxu0  ;;  %v801_v59 = vpop.f32.mrf.mxu1  ;;  %v2060_v32 = vmul.f32 %v2115_v9, %v1849_v23 }
  0xfa   :  { %v2117_v51 = vpop.eup %2116  ;;  %1624 = vmatmul.f32.gmra.mxu0 %v2541_v33  ;;  %v2056_v41 = vmul.f32 %v2052_v4, %v1925_v19  ;;  %v888_v11 = vpop.f32.mrf.mxu2  ;;  %v802_v42 = vadd.f32 %v801_v59, %v748_v52  ;;  %v1997_v33 = vand.u32 2147483647, %v3563_v12  ;;  %v753_v34 = vadd.f32 %v752_v20, %v686_v62 }
  0xfb   :  { %v1989_v35 = vmul.f32 %v2117_v51, %v3563_v12  ;;  %v937_v14 = vpop.f32.mrf.mxu3  ;;  %vm1994_vm8 = vweird.f32 %v2117_v51 }
  0xfc   :  { %v2064_v1 = vadd.f32 %v2060_v32, %v2056_v41  ;;  %v889_v24 = vadd.f32 %v888_v11, %v802_v42  ;;  %vm1995_vm10 = vmor %vm1993_vm9, %vm1994_vm8  ;;  %vm1998_vm11 = vcmp.eq.f32.partialorder %v1997_v33, 8.507059e+37 }
  0xfd   :  { %v1990_v57 = vsub.f32 1.0, %v1989_v35 }
  0xfe   :  { %1763 = vmatmul.f32.gmra.mxu2 %v2510_v60  ;;  %2118 = vtanh.f32 %v2064_v1  ;;  %2080 = vst [vmem:[%s3679_s4] sm:$0xff] %v2064_v1  ;;  %v938_v27 = vadd.f32 %v937_v14, %v889_v24 }
  0xff   :  { %v1991_v48 = vmul.f32 %v2117_v51, %v1990_v57 }
 0x100   :  { %1812 = vmatmul.f32.gmra.mxu3 %v2510_v60  ;;  %v2093_v58 = vmul.f32 -1.442695, %v938_v27 }
 0x101   :  { %v1992_v47 = vadd.f32 %v2117_v51, %v1991_v48  ;;  %1680 = vmatmul.f32.gmra.mxu1 %v3894_v50  ;;  %v2053_v50 = vld [vmem:[%s3678_s2 + $0x8] sm:$0xff] }
 0x102   :  { %1629 = vmatmul.f32.gmra.mxu0 %v3859_v15  ;;  %2120 = vpow2.f32 %v2093_v58 }
 0x103   :  { %v1996_v45 = vsel %vm1995_vm10, %v2117_v51, %v1992_v47  ;;  %v757_v54 = vpop.f32.mrf.mxu0  ;;  %v807_v16 = vpop.f32.mrf.mxu1 }
 0x104   :  { %v2119_v0 = vpop.eup %2118  ;;  %v2001_v17 = vsel %vm1998_vm11, %v2000_v61, %v1996_v45  ;;  %v808_v36 = vadd.f32 %v807_v16, %v753_v34  ;;  %v892_v29 = vpop.f32.mrf.mxu2  ;;  %v758_v26 = vadd.f32 %v757_v54, %v690_v37 }
 0x105   :  { %v2072_v43 = vmul.f32 %v2119_v0, %v2001_v17  ;;  %v941_v25 = vpop.f32.mrf.mxu3 }
 0x106   :  { %1767 = vmatmul.f32.gmra.mxu2 %v3864_v38  ;;  %v893_v60 = vadd.f32 %v892_v29, %v808_v36 }
 0x107   :  { %2076 = vst [vmem:[%s3680_s3] sm:$0xff] %v2072_v43 }
 0x108   :  { %1816 = vmatmul.f32.gmra.mxu3 %v3864_v38  ;;  %v942_v15 = vadd.f32 %v941_v25, %v893_v60  ;;  %v2121_v6 = vpop.eup %2120 }
 0x109   :  { %1686 = vmatmul.f32.gmra.mxu1 %v3895_v13  ;;  %v1833_v40 = vadd.f32 1.0, %v2121_v6 }
 0x10a   :  { %v2097_v12 = vmul.f32 -1.442695, %v942_v15 }
 0x10b   :  { %2122 = vrcp.f32 %v1833_v40  ;;  %vm1856_vm13 = vweird.f32 %v1833_v40  ;;  %v1862_v32 = vand.u32 2147483648, %v1833_v40  ;;  %v1860_v42 = vand.u32 2147483647, %v1833_v40 }
 0x10c   :  { %2124 = vpow2.f32 %v2097_v12 }
 0x10d   :  { %v762_v21 = vpop.f32.mrf.mxu0  ;;  %v813_v5 = vpop.f32.mrf.mxu1  ;;  %v1863_v47 = vor.u32 1.1754944e-38, %v1862_v32  ;;  %vm1861_vm2 = vcmp.eq.f32.partialorder %v1860_v42, 8.507059e+37 }
 0x10e   :  { %v814_v31 = vadd.f32 %v813_v5, %v758_v26  ;;  %v896_v2 = vpop.f32.mrf.mxu2  ;;  %v945_v30 = vpop.f32.mrf.mxu3  ;;  %v763_v8 = vadd.f32 %v762_v21, %v694_v49 }
 0x110   :  { %v897_v56 = vadd.f32 %v896_v2, %v814_v31 }
 0x111   :  { %v2123_v22 = vpop.eup %2122 }
 0x112   :  { %v946_v38 = vadd.f32 %v945_v30, %v897_v56  ;;  %v2125_v7 = vpop.eup %2124  ;;  %v1852_v18 = vmul.f32 %v2123_v22, %v1833_v40  ;;  %vm1857_vm12 = vweird.f32 %v2123_v22 }
 0x113   :  { %v1909_v10 = vadd.f32 1.0, %v2125_v7  ;;  %vm3618_vm15 = vmor %vm1856_vm13, %vm1857_vm12 }
 0x114   :  { %v2101_v3 = vmul.f32 -1.442695, %v946_v38  ;;  %v1853_v53 = vsub.f32 1.0, %v1852_v18 }
 0x115   :  { %2126 = vrcp.f32 %v1909_v10  ;;  %v1938_v41 = vand.u32 2147483648, %v1909_v10  ;;  %v1936_v57 = vand.u32 2147483647, %v1909_v10  ;;  %vm1932_vm0 = vweird.f32 %v1909_v10 }
 0x116   :  { %2128 = vpow2.f32 %v2101_v3  ;;  %v1854_v23 = vmul.f32 %v2123_v22, %v1853_v53 }
 0x117   :  { %v819_v39 = vpop.f32.mrf.mxu1  ;;  %v3616_v4 = vpop.f32.mrf.mxu0  ;;  %v1939_v62 = vor.u32 1.1754944e-38, %v1938_v41  ;;  %vm1937_vm3 = vcmp.eq.f32.partialorder %v1936_v57, 8.507059e+37 }
 0x118   :  { %v820_v9 = vadd.f32 %v819_v39, %v763_v8  ;;  %v900_v46 = vpop.f32.mrf.mxu2  ;;  %v949_v63 = vpop.f32.mrf.mxu3  ;;  %v1855_v28 = vadd.f32 %v2123_v22, %v1854_v23 }
 0x11a   :  { %v901_v51 = vadd.f32 %v900_v46, %v820_v9  ;;  %v1859_v44 = vsel %vm3618_vm15, %v2123_v22, %v1855_v28 }
 0x11b   :  { %v2127_v19 = vpop.eup %2126  ;;  %v1864_v34 = vsel %vm1861_vm2, %v1863_v47, %v1859_v44 }
 0x11c   :  { %v950_v52 = vadd.f32 %v949_v63, %v901_v51  ;;  %v2129_v20 = vpop.eup %2128  ;;  %v1928_v59 = vmul.f32 %v2127_v19, %v1909_v10  ;;  %vm1933_vm14 = vweird.f32 %v2127_v19 }
 0x11d   :  { %v1985_v35 = vadd.f32 1.0, %v2129_v20  ;;  %vm1934_vm1 = vmor %vm1932_vm0, %vm1933_vm14 }
 0x11e   :  { %2130 = vtanh.f32 %v950_v52  ;;  %v1929_v55 = vsub.f32 1.0, %v1928_v59 }
 0x11f   :  { %2132 = vrcp.f32 %v1985_v35  ;;  %v2014_v60 = vand.u32 2147483648, %v1985_v35  ;;  %v2012_v6 = vand.u32 2147483647, %v1985_v35  ;;  %vm2008_vm5 = vweird.f32 %v1985_v35 }
 0x120   :  { %v1930_v11 = vmul.f32 %v2127_v19, %v1929_v55 }
 0x121   :  { %v998_v1 = vpop.f32.mrf.mxu0  ;;  %v1115_v24 = vpop.f32.mrf.mxu1  ;;  %v2015_v12 = vor.u32 1.1754944e-38, %v2014_v60  ;;  %vm2013_vm7 = vcmp.eq.f32.partialorder %v2012_v6, 8.507059e+37 }
 0x122   :  { %v1181_v48 = vpop.f32.mrf.mxu2  ;;  %v1931_v33 = vadd.f32 %v2127_v19, %v1930_v11  ;;  %v1116_v38 = vadd.f32 %v1115_v24, %v3616_v4 }
 0x123   :  { %v1235_v45 = vpop.f32.mrf.mxu3 }
 0x124   :  { %v2131_v27 = vpop.eup %2130  ;;  %v1935_v58 = vsel %vm1934_vm1, %v2127_v19, %v1931_v33  ;;  %v1182_v10 = vadd.f32 %v1181_v48, %v1116_v38 }
 0x125   :  { %v2133_v61 = vpop.eup %2132  ;;  %v1940_v54 = vsel %vm1937_vm3, %v1939_v62, %v1935_v58  ;;  %v2061_v17 = vmul.f32 %v2131_v27, %v1864_v34 }
 0x126   :  { %v2004_v16 = vmul.f32 %v2133_v61, %v1985_v35  ;;  %v2057_v0 = vmul.f32 %v2053_v50, %v1940_v54  ;;  %vm2009_vm4 = vweird.f32 %v2133_v61  ;;  %v1236_v8 = vadd.f32 %v1235_v45, %v1182_v10 }
 0x127   :  { %vm2010_vm6 = vmor %vm2008_vm5, %vm2009_vm4 }
 0x128   :  { %v2005_v36 = vsub.f32 1.0, %v2004_v16  ;;  %v2065_v29 = vadd.f32 %v2061_v17, %v2057_v0 }
 0x12a   :  { %v2006_v43 = vmul.f32 %v2133_v61, %v2005_v36  ;;  %2134 = vtanh.f32 %v2065_v29  ;;  %2081 = vst [vmem:[%s3679_s4 + $0x8] sm:$0xff] %v2065_v29 }
 0x12b   :  { %v1006_v25 = vpop.f32.mrf.mxu0  ;;  %v1119_v15 = vpop.f32.mrf.mxu1 }
 0x12c   :  { %v1186_v13 = vpop.f32.mrf.mxu2  ;;  %v2007_v37 = vadd.f32 %v2133_v61, %v2006_v43  ;;  %v1241_v26 = vpop.f32.mrf.mxu3  ;;  %v1120_v53 = vadd.f32 %v1119_v15, %v998_v1 }
 0x12e   :  { %v2011_v40 = vsel %vm2010_vm6, %v2133_v61, %v2007_v37  ;;  %v1187_v23 = vadd.f32 %v1186_v13, %v1120_v53 }
 0x12f   :  { %v2016_v5 = vsel %vm2013_vm7, %v2015_v12, %v2011_v40 }
 0x130   :  { %v2135_v21 = vpop.eup %2134  ;;  %v1242_v20 = vadd.f32 %v1241_v26, %v1187_v23 }
 0x131   :  { %v2073_v31 = vmul.f32 %v2135_v21, %v2016_v5 }
 0x133   :  { %2077 = vst [vmem:[%s3680_s3 + $0x8] sm:$0xff] %v2073_v31 }
 0x135   :  { %v1014_v2 = vpop.f32.mrf.mxu0  ;;  %v1123_v56 = vpop.f32.mrf.mxu1 }
 0x136   :  { %v1191_v30 = vpop.f32.mrf.mxu2  ;;  %v1247_v22 = vpop.f32.mrf.mxu3  ;;  %v1124_v59 = vadd.f32 %v1123_v56, %v1006_v25 }
 0x138   :  { %v1192_v42 = vadd.f32 %v1191_v30, %v1124_v59 }
 0x13a   :  { %v1248_v24 = vadd.f32 %v1247_v22, %v1192_v42 }
 0x13f   :  { %v1127_v7 = vpop.f32.mrf.mxu1  ;;  %v1322_v18 = vpop.f32.mrf.mxu0 }
 0x140   :  { %v1196_v49 = vpop.f32.mrf.mxu2  ;;  %v1253_v3 = vpop.f32.mrf.mxu3  ;;  %v1323_v39 = vadd.f32 %v1322_v18, %v1236_v8  ;;  %v1128_v14 = vadd.f32 %v1127_v7, %v1014_v2 }
 0x142   :  { %v1197_v61 = vadd.f32 %v1196_v49, %v1128_v14 }
 0x144   :  { %v1254_v0 = vadd.f32 %v1253_v3, %v1197_v61  ;;  %v2054_v3 = vld [vmem:[%s3678_s2 + $0x10] sm:$0xff] }
 0x148   :  { %v1371_v9 = vpop.f32.mrf.mxu1 }
 0x149   :  { %v1326_v46 = vpop.f32.mrf.mxu0  ;;  %v1372_v51 = vadd.f32 %v1371_v9, %v1323_v39 }
 0x14a   :  { %v1424_v63 = vpop.f32.mrf.mxu2  ;;  %v1327_v35 = vadd.f32 %v1326_v46, %v1242_v20 }
 0x14b   :  { %v2094_v19 = vmul.f32 -1.442695, %v1372_v51  ;;  %v1549_v52 = vpop.f32.mrf.mxu3 }
 0x14c   :  { %v1550_v37 = vadd.f32 %v1549_v52, %v1424_v63 }
 0x14d   :  { %2136 = vpow2.f32 %v2094_v19 }
 0x152   :  { %v1375_v4 = vpop.f32.mrf.mxu1 }
 0x153   :  { %v2137_v55 = vpop.eup %2136  ;;  %v1330_v28 = vpop.f32.mrf.mxu0  ;;  %v1376_v41 = vadd.f32 %v1375_v4, %v1327_v35 }
 0x154   :  { %v3634_v32 = vpop.f32.mrf.mxu2  ;;  %v1834_v11 = vadd.f32 1.0, %v2137_v55  ;;  %v3636_v1 = vpop.f32.mrf.mxu3  ;;  %v1331_v48 = vadd.f32 %v1330_v28, %v1248_v24 }
 0x155   :  { %v2098_v57 = vmul.f32 -1.442695, %v1376_v41  ;;  %v1554_v4 = vadd.f32 %v3636_v1, %v3634_v32 }
 0x156   :  { %2138 = vrcp.f32 %v1834_v11  ;;  %vm1871_vm9 = vweird.f32 %v1834_v11  ;;  %v1877_v5 = vand.u32 2147483648, %v1834_v11  ;;  %v1875_v2 = vand.u32 2147483647, %v1834_v11 }
 0x157   :  { %2140 = vpow2.f32 %v2098_v57 }
 0x158   :  { %v1878_v10 = vor.u32 1.1754944e-38, %v1877_v5  ;;  %vm1876_vm14 = vcmp.eq.f32.partialorder %v1875_v2, 8.507059e+37 }
 0x15c   :  { %v2139_v44 = vpop.eup %2138  ;;  %v1379_v33 = vpop.f32.mrf.mxu1 }
 0x15d   :  { %v2141_v27 = vpop.eup %2140  ;;  %v1867_v62 = vmul.f32 %v2139_v44, %v1834_v11  ;;  %v1334_v47 = vpop.f32.mrf.mxu0  ;;  %v1380_v50 = vadd.f32 %v1379_v33, %v1331_v48  ;;  %vm1872_vm8 = vweird.f32 %v2139_v44 }
 0x15e   :  { %v3638_v58 = vpop.f32.mrf.mxu2  ;;  %v1910_v45 = vadd.f32 1.0, %v2141_v27  ;;  %v3640_v16 = vpop.f32.mrf.mxu3  ;;  %v1335_v17 = vadd.f32 %v1334_v47, %v1254_v0  ;;  %vm3646_vm11 = vmor %vm1871_vm9, %vm1872_vm8 }
 0x15f   :  { %v2102_v34 = vmul.f32 -1.442695, %v1380_v50  ;;  %v1868_v54 = vsub.f32 1.0, %v1867_v62 }
 0x160   :  { %2142 = vrcp.f32 %v1910_v45  ;;  %v1953_v21 = vand.u32 2147483648, %v1910_v45  ;;  %v1951_v56 = vand.u32 2147483647, %v1910_v45  ;;  %vm1947_vm12 = vweird.f32 %v1910_v45 }
 0x161   :  { %2144 = vpow2.f32 %v2102_v34  ;;  %v1869_v36 = vmul.f32 %v2139_v44, %v1868_v54  ;;  %v1558_v34 = vadd.f32 %v3640_v16, %v3638_v58 }
 0x162   :  { %v1954_v49 = vor.u32 1.1754944e-38, %v1953_v21  ;;  %vm1952_vm15 = vcmp.eq.f32.partialorder %v1951_v56, 8.507059e+37 }
 0x163   :  { %v1870_v26 = vadd.f32 %v2139_v44, %v1869_v36 }
 0x165   :  { %v1874_v38 = vsel %vm3646_vm11, %v2139_v44, %v1870_v26 }
 0x166   :  { %v2143_v29 = vpop.eup %2142  ;;  %v1383_v43 = vpop.f32.mrf.mxu1  ;;  %v1879_v63 = vsel %vm1876_vm14, %v1878_v10, %v1874_v38 }
 0x167   :  { %v2145_v60 = vpop.eup %2144  ;;  %v1943_v25 = vmul.f32 %v2143_v29, %v1910_v45  ;;  %v1384_v15 = vadd.f32 %v1383_v43, %v1335_v17  ;;  %v1615_v6 = vpop.f32.mrf.mxu0  ;;  %vm1948_vm10 = vweird.f32 %v2143_v29 }
 0x168   :  { %v3642_v13 = vpop.f32.mrf.mxu2  ;;  %v1986_v40 = vadd.f32 1.0, %v2145_v60  ;;  %v3644_v30 = vpop.f32.mrf.mxu3  ;;  %v1616_v18 = vadd.f32 %v1615_v6, %v1550_v37  ;;  %vm1949_vm13 = vmor %vm1947_vm12, %vm1948_vm10 }
 0x169   :  { %v1944_v12 = vsub.f32 1.0, %v1943_v25  ;;  %2146 = vtanh.f32 %v1384_v15  ;;  %v1562_v58 = vadd.f32 %v3644_v30, %v3642_v13 }
 0x16a   :  { %2148 = vrcp.f32 %v1986_v40  ;;  %v2029_v11 = vand.u32 2147483648, %v1986_v40  ;;  %v2027_v14 = vand.u32 2147483647, %v1986_v40  ;;  %vm2023_vm1 = vweird.f32 %v1986_v40 }
 0x16b   :  { %v1945_v31 = vmul.f32 %v2143_v29, %v1944_v12 }
 0x16c   :  { %v2030_v62 = vor.u32 1.1754944e-38, %v2029_v11  ;;  %vm2028_vm3 = vcmp.eq.f32.partialorder %v2027_v14, 8.507059e+37 }
 0x16d   :  { %v1946_v7 = vadd.f32 %v2143_v29, %v1945_v31 }
 0x16e   :  { %v1669_v8 = vpop.f32.mrf.mxu1 }
 0x16f   :  { %v2147_v53 = vpop.eup %2146  ;;  %v1950_v39 = vsel %vm1949_vm13, %v2143_v29, %v1946_v7  ;;  %v1620_v9 = vpop.f32.mrf.mxu0  ;;  %v1670_v46 = vadd.f32 %v1669_v8, %v1616_v18 }
 0x170   :  { %v2149_v51 = vpop.eup %2148  ;;  %v1955_v23 = vsel %vm1952_vm15, %v1954_v49, %v1950_v39  ;;  %v2062_v20 = vmul.f32 %v2147_v53, %v1879_v63  ;;  %v1621_v24 = vadd.f32 %v1620_v9, %v1554_v4 }
 0x171   :  { %v2019_v19 = vmul.f32 %v2149_v51, %v1986_v40  ;;  %v2058_v52 = vmul.f32 %v2054_v3, %v1955_v23  ;;  %v1756_v59 = vpop.f32.mrf.mxu2  ;;  %vm2024_vm0 = vweird.f32 %v2149_v51 }
 0x172   :  { %v1757_v35 = vadd.f32 %v1756_v59, %v1670_v46  ;;  %vm2025_vm2 = vmor %vm2023_vm1, %vm2024_vm0 }
 0x173   :  { %v2020_v55 = vsub.f32 1.0, %v2019_v19  ;;  %v2066_v28 = vadd.f32 %v2062_v20, %v2058_v52  ;;  %v1805_v41 = vpop.f32.mrf.mxu3 }
 0x174   :  { %v1806_v42 = vadd.f32 %v1805_v41, %v1757_v35  ;;  %v2055_v41 = vld [vmem:[%s3678_s2 + $0x18] sm:$0xff] }
 0x175   :  { %v2021_v57 = vmul.f32 %v2149_v51, %v2020_v55  ;;  %2150 = vtanh.f32 %v2066_v28  ;;  %2082 = vst [vmem:[%s3679_s4 + $0x10] sm:$0xff] %v2066_v28 }
 0x176   :  { %v2095_v48 = vmul.f32 -1.442695, %v1806_v42  ;;  %v1675_v44 = vpop.f32.mrf.mxu1 }
 0x177   :  { %v2022_v33 = vadd.f32 %v2149_v51, %v2021_v57  ;;  %v1676_v27 = vadd.f32 %v1675_v44, %v1621_v24  ;;  %v1625_v32 = vpop.f32.mrf.mxu0 }
 0x178   :  { %2152 = vpow2.f32 %v2095_v48  ;;  %v1626_v36 = vadd.f32 %v1625_v32, %v1558_v34 }
 0x179   :  { %v2026_v1 = vsel %vm2025_vm2, %v2149_v51, %v2022_v33  ;;  %v1760_v47 = vpop.f32.mrf.mxu2 }
 0x17a   :  { %v1761_v50 = vadd.f32 %v1760_v47, %v1676_v27  ;;  %v2031_v61 = vsel %vm2028_vm3, %v2030_v62, %v2026_v1 }
 0x17b   :  { %v2151_v45 = vpop.eup %2150  ;;  %v1809_v54 = vpop.f32.mrf.mxu3 }
 0x17c   :  { %v2074_v0 = vmul.f32 %v2151_v45, %v2031_v61  ;;  %v1810_v17 = vadd.f32 %v1809_v54, %v1761_v50 }
 0x17e   :  { %v2153_v29 = vpop.eup %2152  ;;  %2078 = vst [vmem:[%s3680_s3 + $0x10] sm:$0xff] %v2074_v0  ;;  %v2099_v43 = vmul.f32 -1.442695, %v1810_v17  ;;  %v1681_v60 = vpop.f32.mrf.mxu1 }
 0x17f   :  { %v1835_v25 = vadd.f32 1.0, %v2153_v29  ;;  %v1682_v15 = vadd.f32 %v1681_v60, %v1626_v36  ;;  %v1630_v37 = vpop.f32.mrf.mxu0 }
 0x180   :  { %2154 = vpow2.f32 %v2099_v43  ;;  %v1631_v26 = vadd.f32 %v1630_v37, %v1562_v58 }
 0x181   :  { %2156 = vrcp.f32 %v1835_v25  ;;  %v1764_v6 = vpop.f32.mrf.mxu2  ;;  %vm1886_vm5 = vweird.f32 %v1835_v25  ;;  %v1892_v63 = vand.u32 2147483648, %v1835_v25  ;;  %v1890_v19 = vand.u32 2147483647, %v1835_v25 }
 0x182   :  { %v1765_v40 = vadd.f32 %v1764_v6, %v1682_v15 }
 0x183   :  { %v1813_v16 = vpop.f32.mrf.mxu3  ;;  %v1893_v28 = vor.u32 1.1754944e-38, %v1892_v63  ;;  %vm1891_vm10 = vcmp.eq.f32.partialorder %v1890_v19, 8.507059e+37 }
 0x184   :  { %v1814_v12 = vadd.f32 %v1813_v16, %v1765_v40 }
 0x186   :  { %v2155_v21 = vpop.eup %2154  ;;  %v2103_v5 = vmul.f32 -1.442695, %v1814_v12  ;;  %v1687_v31 = vpop.f32.mrf.mxu1 }
 0x187   :  { %v2157_v2 = vpop.eup %2156  ;;  %v1911_v56 = vadd.f32 1.0, %v2155_v21  ;;  %v1688_v22 = vadd.f32 %v1687_v31, %v1631_v26 }
 0x188   :  { %v1882_v38 = vmul.f32 %v2157_v2, %v1835_v25  ;;  %2158 = vpow2.f32 %v2103_v5  ;;  %vm1887_vm4 = vweird.f32 %v2157_v2 }
 0x189   :  { %2160 = vrcp.f32 %v1911_v56  ;;  %v1768_v7 = vpop.f32.mrf.mxu2  ;;  %v1968_v51 = vand.u32 2147483648, %v1911_v56  ;;  %v1966_v52 = vand.u32 2147483647, %v1911_v56  ;;  %vm1888_vm7 = vmor %vm1886_vm5, %vm1887_vm4  ;;  %vm1962_vm8 = vweird.f32 %v1911_v56 }
 0x18a   :  { %v1883_v18 = vsub.f32 1.0, %v1882_v38  ;;  %v1769_v49 = vadd.f32 %v1768_v7, %v1688_v22 }
 0x18b   :  { %v1817_v10 = vpop.f32.mrf.mxu3  ;;  %v1969_v55 = vor.u32 1.1754944e-38, %v1968_v51  ;;  %vm1967_vm11 = vcmp.eq.f32.partialorder %v1966_v52, 8.507059e+37 }
 0x18c   :  { %v1818_v3 = vadd.f32 %v1817_v10, %v1769_v49  ;;  %v1884_v53 = vmul.f32 %v2157_v2, %v1883_v18 }
 0x18e   :  { %v2159_v8 = vpop.eup %2158  ;;  %2162 = vtanh.f32 %v1818_v3  ;;  %v1885_v46 = vadd.f32 %v2157_v2, %v1884_v53 }
 0x18f   :  { %v2161_v13 = vpop.eup %2160  ;;  %v1987_v30 = vadd.f32 1.0, %v2159_v8 }
 0x190   :  { %v1958_v39 = vmul.f32 %v2161_v13, %v1911_v56  ;;  %vm1963_vm6 = vweird.f32 %v2161_v13  ;;  %v1889_v59 = vsel %vm1888_vm7, %v2157_v2, %v1885_v46 }
 0x191   :  { %2164 = vrcp.f32 %v1987_v30  ;;  %vm1964_vm9 = vmor %vm1962_vm8, %vm1963_vm6  ;;  %v1894_v57 = vsel %vm1891_vm10, %v1893_v28, %v1889_v59  ;;  %v2044_v1 = vand.u32 2147483648, %v1987_v30  ;;  %vm2038_vm13 = vweird.f32 %v1987_v30 }
 0x192   :  { %v1959_v9 = vsub.f32 1.0, %v1958_v39  ;;  %v2042_v62 = vand.u32 2147483647, %v1987_v30 }
 0x193   :  { %v2045_v50 = vor.u32 1.1754944e-38, %v2044_v1 }
 0x194   :  { %v1960_v23 = vmul.f32 %v2161_v13, %v1959_v9  ;;  %v2163_v20 = vpop.eup %2162  ;;  %vm2043_vm15 = vcmp.eq.f32.partialorder %v2042_v62, 8.507059e+37 }
 0x195   :  { %v2063_v44 = vmul.f32 %v2163_v20, %v1894_v57 }
 0x196   :  { %v1961_v35 = vadd.f32 %v2161_v13, %v1960_v23 }
 0x197   :  { %v2165_v4 = vpop.eup %2164 }
 0x198   :  { %v2034_v11 = vmul.f32 %v2165_v4, %v1987_v30  ;;  %v1965_v42 = vsel %vm1964_vm9, %v2161_v13, %v1961_v35  ;;  %vm2039_vm12 = vweird.f32 %v2165_v4 }
 0x199   :  { %v1970_v24 = vsel %vm1967_vm11, %v1969_v55, %v1965_v42  ;;  %vm2040_vm14 = vmor %vm2038_vm13, %vm2039_vm12 }
 0x19a   :  { %v2035_v14 = vsub.f32 1.0, %v2034_v11  ;;  %v2059_v48 = vmul.f32 %v2055_v41, %v1970_v24 }
 0x19c   :  { %v2036_v33 = vmul.f32 %v2165_v4, %v2035_v14  ;;  %v2067_v27 = vadd.f32 %v2063_v44, %v2059_v48 }
 0x19e   :  { %v2037_v32 = vadd.f32 %v2165_v4, %v2036_v33  ;;  %2166 = vtanh.f32 %v2067_v27  ;;  %2083 = vst [vmem:[%s3679_s4 + $0x18] sm:$0xff] %v2067_v27 }
 0x1a0   :  { %v2041_v47 = vsel %vm2040_vm14, %v2165_v4, %v2037_v32 }
 0x1a1   :  { %v2046_v61 = vsel %vm2043_vm15, %v2045_v50, %v2041_v47 }
 0x1a4   :  { %v2167_v45 = vpop.eup %2166 }
 0x1a5   :  { %v2075_v34 = vmul.f32 %v2167_v45, %v2046_v61 }
 0x1a7   :  { %2079 = vst [vmem:[%s3680_s3 + $0x18] sm:$0xff] %v2075_v34 }

</bundles_post_ra>
